<compile_context>
chip_gen: v7x
topology: tpu7x:2x2x1
jax: 0.10.0
libtpu: 0.0.40
codegen_flags: <defaults>
</compile_context>

<pallas_src>
import functools

import jax
import jax.numpy as jnp
from jax import lax
from jax.experimental import pallas as pl
from jax.experimental.pallas import tpu as pltpu


def _round_up(x, m):
    return (x + m - 1) // m * m


def _lstm_kernel(gx_ref, whh_ref, v_ref, bout_ref, out_ref, h_ref, c_ref,
                 *, seq_len, ragged, recurrent_bf16):
    # gx_ref:   (Tc, Bp, 4*Hp)  precomputed x@W_ih^T + (b_ih+b_hh), gate-major,
    #                           streamed per grid step (double-buffered).
    # whh_ref:  (Hp, 4*Hp)      gate-major padded W_hh^T (VMEM-resident).
    # v_ref:    (Hp, 1)         readout weight (zero-padded rows).
    # bout_ref: (1, 1)          readout bias.
    # out_ref:  (Bp, 1)         sigmoid(h_T @ V + b).
    # h_ref/c_ref: (Bp, Hp)     VMEM scratch carry, persists across grid steps.
    tb = pl.program_id(0)
    n_tb = pl.num_programs(0)
    Tc, Bp, _ = gx_ref.shape
    Hp = whh_ref.shape[0]

    @pl.when(tb == 0)
    def _init():
        h_ref[...] = jnp.zeros_like(h_ref)
        c_ref[...] = jnp.zeros_like(c_ref)

    # Loop-invariant: read whh once per chunk, outside the recurrence.
    whh = whh_ref[...]
    if recurrent_bf16:
        whh = whh.astype(jnp.bfloat16)

    def step(t, carry):
        h, c = carry
        lhs = h.astype(jnp.bfloat16) if recurrent_bf16 else h
        # Single MXU matmul per step; gate columns start at multiples of Hp
        # (Hp % 128 == 0) so the four slices below are lane-aligned sub-views.
        gates = gx_ref[t] + jnp.dot(lhs, whh,
                                    preferred_element_type=jnp.float32)
        i = jax.nn.sigmoid(gates[:, 0 * Hp:1 * Hp])
        f = jax.nn.sigmoid(gates[:, 1 * Hp:2 * Hp])
        g = jnp.tanh(gates[:, 2 * Hp:3 * Hp])
        o = jax.nn.sigmoid(gates[:, 3 * Hp:4 * Hp])
        c_new = f * c + i * g
        h_new = o * jnp.tanh(c_new)
        if ragged:
            # Mask padded tail steps via the carry (a "zeroed" gates step would
            # still mutate h/c through the bias and sigmoid(0)=0.5).
            valid = (tb * Tc + t) < seq_len
            h_new = jnp.where(valid, h_new, h)
            c_new = jnp.where(valid, c_new, c)
        return (h_new, c_new)

    # Full unroll is safe while every (Bp, Hp) temp is ~1 vreg; back off for
    # larger padded batches to avoid spills on the serial chain.
    unroll = True if Bp <= 16 else 4
    h_fin, c_fin = lax.fori_loop(0, Tc, step, (h_ref[...], c_ref[...]),
                                 unroll=unroll)
    h_ref[...] = h_fin
    c_ref[...] = c_fin

    @pl.when(tb == n_tb - 1)
    def _readout():
        logit = (jnp.dot(h_fin, v_ref[...], preferred_element_type=jnp.float32)
                 + bout_ref[...])
        out_ref[...] = jax.nn.sigmoid(logit)


def lstm_model_forward(x, params, *, time_chunk=32, recurrent_bf16=False):
    """x: (batch, seq, channel*2) float32. Returns (batch, 1)."""
    w_ih, w_hh, b_ih, b_hh, V, b = params
    B, T, IN = x.shape
    H = w_hh.shape[1]

    Bp = _round_up(B, 8)        # sublane-aligned batch
    Hp = _round_up(H, 128)      # lane-aligned gate width
    elt = 4

    # ---- VMEM budget (v7x-safe) ---------------------------------------------
    try:
        vmem_cap = int(pltpu.get_tpu_info().vmem_capacity_bytes)
    except Exception:
        vmem_cap = 64 * 2**20   # conservative v7x per-TC capacity
    stream_budget = vmem_cap // 4
    max_tc = max(1, stream_budget // (2 * Bp * 4 * Hp * elt))

    # ---- ragged time chunking -----------------------------------------------
    Tc = max(1, min(T, time_chunk, max_tc))
    nT = pl.cdiv(T, Tc)
    Tp = nT * Tc
    ragged = (T % Tc) != 0

    # ---- layout prep: projection + gate-major padding in plain XLA ----------
    x_f = x.astype(jnp.float32)
    w_ih_f = w_ih.astype(jnp.float32)
    bias = (b_ih + b_hh).astype(jnp.float32)
    # gates_x[b, t, :] = x[b, t, :] @ W_ih^T + (b_ih + b_hh)   -> (B, T, 4H)
    gates_x = jnp.einsum('bti,gi->btg', x_f, w_ih_f) + bias
    gates_x = gates_x.reshape(B, T, 4, H)
    gates_x = jnp.pad(gates_x,
                      ((0, Bp - B), (0, Tp - T), (0, 0), (0, Hp - H)))
    gates_tm = jnp.transpose(gates_x, (1, 0, 2, 3)).reshape(Tp, Bp, 4 * Hp)

    # Gate-major padded recurrent weight: gate k occupies cols [k*Hp, k*Hp+H).
    whh_t = jnp.transpose(w_hh).astype(jnp.float32).reshape(H, 4, H)
    whh_p = jnp.pad(whh_t, ((0, Hp - H), (0, 0), (0, Hp - H))).reshape(Hp, 4 * Hp)
    v_p = jnp.pad(V.astype(jnp.float32).reshape(H, 1), ((0, Hp - H), (0, 0)))
    b_p = b.astype(jnp.float32).reshape(1, 1)

    grid_spec = pltpu.PrefetchScalarGridSpec(
        num_scalar_prefetch=0,
        grid=(nT,),
        in_specs=[
            pl.BlockSpec((Tc, Bp, 4 * Hp), lambda t: (t, 0, 0)),  # streamed gates
            pl.BlockSpec((Hp, 4 * Hp), lambda t: (0, 0)),         # resident whh
            pl.BlockSpec((Hp, 1), lambda t: (0, 0)),
            pl.BlockSpec((1, 1), lambda t: (0, 0)),
        ],
        out_specs=pl.BlockSpec((Bp, 1), lambda t: (0, 0)),
        scratch_shapes=[
            pltpu.VMEM((Bp, Hp), jnp.float32),                    # h carry
            pltpu.VMEM((Bp, Hp), jnp.float32),                    # c carry
        ],
    )

    vmem_need = (
        2 * Tc * Bp * 4 * Hp * elt            # double-buffered gate chunk
        + Hp * 4 * Hp * elt                   # whh
        + (Hp + 1) * elt                      # V + b
        + 2 * Bp * Hp * elt                   # h/c scratch
        + Bp * elt                            # output
    )
    vmem_limit = int(min(vmem_cap - (2 << 20),
                         max(vmem_need + (2 << 20), 16 * 2**20)))

    cost = pl.CostEstimate(
        flops=2 * T * Bp * Hp * 4 * Hp + 12 * T * Bp * 4 * Hp + 2 * Bp * Hp,
        transcendentals=5 * T * Bp * Hp,
        bytes_accessed=(gates_tm.size + whh_p.size + v_p.size + 1 + Bp) * elt,
    )

    kernel = functools.partial(_lstm_kernel, seq_len=T, ragged=ragged,
                               recurrent_bf16=recurrent_bf16)

    out_p = pl.pallas_call(
        kernel,
        out_shape=jax.ShapeDtypeStruct((Bp, 1), jnp.float32),
        grid_spec=grid_spec,
        compiler_params=pltpu.CompilerParams(
            dimension_semantics=("arbitrary",),
            vmem_limit_bytes=vmem_limit,
        ),
        cost_estimate=cost,
    )(gates_tm, whh_p, v_p, b_p)
    return out_p[:B]


def init_params(key, win, channel):
    """Deterministic synthetic init matching the PyTorch module's shapes."""
    hidden = win * channel // 4
    in_size = channel * 2
    k = jax.random.split(key, 6)
    scale = 1.0 / jnp.sqrt(hidden)  # PyTorch LSTM default uniform bound
    w_ih = jax.random.uniform(k[0], (4 * hidden, in_size), jnp.float32, -scale, scale)
    w_hh = jax.random.uniform(k[1], (4 * hidden, hidden), jnp.float32, -scale, scale)
    b_ih = jax.random.uniform(k[2], (4 * hidden,), jnp.float32, -scale, scale)
    b_hh = jax.random.uniform(k[3], (4 * hidden,), jnp.float32, -scale, scale)
    V = 0.1 * jax.random.normal(k[4], (hidden, 1), jnp.float32)
    b = 0.1 * jax.random.normal(k[5], (1,), jnp.float32)
    return (w_ih, w_hh, b_ih, b_hh, V, b)


def _reference_forward(x, params):
    """Pure-JAX reference (same math, no Pallas)."""
    w_ih, w_hh, b_ih, b_hh, V, b = params
    B, T, IN = x.shape
    H = w_hh.shape[1]
    h = jnp.zeros((B, H), jnp.float32)
    c = jnp.zeros((B, H), jnp.float32)
    for t in range(T):
        gates = x[:, t, :] @ w_ih.T + b_ih + h @ w_hh.T + b_hh
        i = jax.nn.sigmoid(gates[:, 0 * H:1 * H])
        f = jax.nn.sigmoid(gates[:, 1 * H:2 * H])
        g = jnp.tanh(gates[:, 2 * H:3 * H])
        o = jax.nn.sigmoid(gates[:, 3 * H:4 * H])
        c = f * c + i * g
        h = o * jnp.tanh(c)
    return jax.nn.sigmoid(h @ V + b)


if __name__ == "__main__":
    win, channel = 16, 4          # hidden = 16, input_size = 8
    batch, seq = 2, 8

    key = jax.random.PRNGKey(0)
    kx, kp = jax.random.split(key)
    x = jax.random.normal(kx, (batch, seq, channel * 2), jnp.float32)
    params = init_params(kp, win, channel)

    out = lstm_model_forward(x, params)
    out = jax.block_until_ready(out)

    ref = _reference_forward(x, params)
    assert out.shape == (batch, 1)
    assert jnp.allclose(out, ref, atol=1e-5, rtol=1e-5)
    print("KERNEL_OK")
</pallas_src>

<mosaic_0001>
module attributes {stable_mosaic.version = 11 : i64} {
  func.func @_lstm_kernel(%arg0: i32, %arg1: memref<8x8x512xf32, #tpu.memory_space<vmem>>, %arg2: memref<128x512xf32, #tpu.memory_space<vmem>>, %arg3: memref<128x1xf32, #tpu.memory_space<vmem>>, %arg4: memref<1x1xf32, #tpu.memory_space<vmem>>, %arg5: memref<8x1xf32, #tpu.memory_space<vmem>>, %arg6: memref<8x128xf32, #tpu.memory_space<vmem>>, %arg7: memref<8x128xf32, #tpu.memory_space<vmem>>) attributes {dimension_semantics = [#tpu.dimension_semantics<arbitrary>], iteration_bounds = array<i64: 1>, scalar_prefetch = 0 : i64, scratch_operands = 2 : i64, tpu.core_type = #tpu.core_type<tc>, window_params = [{transform_indices = @transform_0, window_bounds = array<i64: 8, 8, 512>}, {pipeline_mode = #tpu.pipeline_mode<synchronous>, transform_indices = @transform_1, window_bounds = array<i64: 128, 512>}, {pipeline_mode = #tpu.pipeline_mode<synchronous>, transform_indices = @transform_2, window_bounds = array<i64: 128, 1>}, {pipeline_mode = #tpu.pipeline_mode<synchronous>, transform_indices = @transform_3, window_bounds = array<i64: 1, 1>}, {pipeline_mode = #tpu.pipeline_mode<synchronous>, transform_indices = @transform_4, window_bounds = array<i64: 8, 1>}]} {
    %c0_i32 = arith.constant 0 : i32
    %0 = arith.cmpi eq, %arg0, %c0_i32 : i32
    %1 = arith.extui %0 : i1 to i32
    %c0_i32_0 = arith.constant 0 : i32
    %2 = arith.cmpi ne, %1, %c0_i32_0 : i32
    scf.if %2 {
      %cst_60 = arith.constant 0.000000e+00 : f32
      %251 = vector.broadcast %cst_60 : f32 to vector<8x128xf32>
      %c0_61 = arith.constant 0 : index
      %c0_62 = arith.constant 0 : index
      %252 = vector.load %arg6[%c0_61, %c0_62] : memref<8x128xf32, #tpu.memory_space<vmem>>, vector<8x128xf32>
      tpu.vector_store %arg6[%c0_61, %c0_62], %251 {strides = array<i32>} : memref<8x128xf32, #tpu.memory_space<vmem>>, vector<8x128xf32>,
      %cst_63 = arith.constant 0.000000e+00 : f32
      %253 = vector.broadcast %cst_63 : f32 to vector<8x128xf32>
      %c0_64 = arith.constant 0 : index
      %c0_65 = arith.constant 0 : index
      %254 = vector.load %arg7[%c0_64, %c0_65] : memref<8x128xf32, #tpu.memory_space<vmem>>, vector<8x128xf32>
      tpu.vector_store %arg7[%c0_64, %c0_65], %253 {strides = array<i32>} : memref<8x128xf32, #tpu.memory_space<vmem>>, vector<8x128xf32>,
    } else {
    }
    %c0 = arith.constant 0 : index
    %c0_1 = arith.constant 0 : index
    %3 = vector.load %arg2[%c0, %c0_1] : memref<128x512xf32, #tpu.memory_space<vmem>>, vector<128x512xf32>
    %c0_2 = arith.constant 0 : index
    %c0_3 = arith.constant 0 : index
    %4 = vector.load %arg6[%c0_2, %c0_3] : memref<8x128xf32, #tpu.memory_space<vmem>>, vector<8x128xf32>
    %c0_4 = arith.constant 0 : index
    %c0_5 = arith.constant 0 : index
    %5 = vector.load %arg7[%c0_4, %c0_5] : memref<8x128xf32, #tpu.memory_space<vmem>>, vector<8x128xf32>
    %c0_i32_6 = arith.constant 0 : i32
    %6 = arith.index_cast %c0_i32_6 : i32 to index
    %c0_7 = arith.constant 0 : index
    %c0_8 = arith.constant 0 : index
    %7 = vector.load %arg1[%6, %c0_7, %c0_8] : memref<8x8x512xf32, #tpu.memory_space<vmem>>, vector<1x8x512xf32>
    %8 = vector.shape_cast %7 : vector<1x8x512xf32> to vector<8x512xf32>
    %cst = arith.constant dense<0.000000e+00> : vector<8x512xf32>
    %9 = tpu.matmul %4, %3, %cst {dimension_numbers = #tpu.dot_dimension_numbers<[1], [0], [0], [1], [0, 0, 1, 1], [], []>} : vector<8x128xf32>, vector<128x512xf32>, vector<8x512xf32> -> vector<8x512xf32>
    %10 = arith.addf %8, %9 : vector<8x512xf32>
    %11 = vector.extract_strided_slice %10 {offsets = [0, 0], sizes = [8, 128], strides = [1, 1]} : vector<8x512xf32> to vector<8x128xf32>
    %12 = arith.negf %11 : vector<8x128xf32>
    %13 = math.exp %12 : vector<8x128xf32>
    %cst_9 = arith.constant 1.000000e+00 : f32
    %14 = vector.broadcast %cst_9 : f32 to vector<8x128xf32>
    %15 = arith.addf %14, %13 : vector<8x128xf32>
    %16 = arith.divf %14, %15 : vector<8x128xf32>
    %17 = vector.extract_strided_slice %10 {offsets = [0, 128], sizes = [8, 128], strides = [1, 1]} : vector<8x512xf32> to vector<8x128xf32>
    %18 = arith.negf %17 : vector<8x128xf32>
    %19 = math.exp %18 : vector<8x128xf32>
    %cst_10 = arith.constant 1.000000e+00 : f32
    %20 = vector.broadcast %cst_10 : f32 to vector<8x128xf32>
    %21 = arith.addf %20, %19 : vector<8x128xf32>
    %22 = arith.divf %20, %21 : vector<8x128xf32>
    %23 = vector.extract_strided_slice %10 {offsets = [0, 256], sizes = [8, 128], strides = [1, 1]} : vector<8x512xf32> to vector<8x128xf32>
    %24 = math.tanh %23 : vector<8x128xf32>
    %25 = vector.extract_strided_slice %10 {offsets = [0, 384], sizes = [8, 128], strides = [1, 1]} : vector<8x512xf32> to vector<8x128xf32>
    %26 = arith.negf %25 : vector<8x128xf32>
    %27 = math.exp %26 : vector<8x128xf32>
    %cst_11 = arith.constant 1.000000e+00 : f32
    %28 = vector.broadcast %cst_11 : f32 to vector<8x128xf32>
    %29 = arith.addf %28, %27 : vector<8x128xf32>
    %30 = arith.divf %28, %29 : vector<8x128xf32>
    %31 = arith.mulf %22, %5 : vector<8x128xf32>
    %32 = arith.mulf %16, %24 : vector<8x128xf32>
    %33 = arith.addf %31, %32 : vector<8x128xf32>
    %34 = math.tanh %33 : vector<8x128xf32>
    %35 = arith.mulf %30, %34 : vector<8x128xf32>
    %c1_i32 = arith.constant 1 : i32
    %36 = arith.index_cast %c1_i32 : i32 to index
    %c0_12 = arith.constant 0 : index
    %c0_13 = arith.constant 0 : index
    %37 = vector.load %arg1[%36, %c0_12, %c0_13] : memref<8x8x512xf32, #tpu.memory_space<vmem>>, vector<1x8x512xf32>
    %38 = vector.shape_cast %37 : vector<1x8x512xf32> to vector<8x512xf32>
    %cst_14 = arith.constant dense<0.000000e+00> : vector<8x512xf32>
    %39 = tpu.matmul %35, %3, %cst_14 {dimension_numbers = #tpu.dot_dimension_numbers<[1], [0], [0], [1], [0, 0, 1, 1], [], []>} : vector<8x128xf32>, vector<128x512xf32>, vector<8x512xf32> -> vector<8x512xf32>
    %40 = arith.addf %38, %39 : vector<8x512xf32>
    %41 = vector.extract_strided_slice %40 {offsets = [0, 0], sizes = [8, 128], strides = [1, 1]} : vector<8x512xf32> to vector<8x128xf32>
    %42 = arith.negf %41 : vector<8x128xf32>
    %43 = math.exp %42 : vector<8x128xf32>
    %cst_15 = arith.constant 1.000000e+00 : f32
    %44 = vector.broadcast %cst_15 : f32 to vector<8x128xf32>
    %45 = arith.addf %44, %43 : vector<8x128xf32>
    %46 = arith.divf %44, %45 : vector<8x128xf32>
    %47 = vector.extract_strided_slice %40 {offsets = [0, 128], sizes = [8, 128], strides = [1, 1]} : vector<8x512xf32> to vector<8x128xf32>
    %48 = arith.negf %47 : vector<8x128xf32>
    %49 = math.exp %48 : vector<8x128xf32>
    %cst_16 = arith.constant 1.000000e+00 : f32
    %50 = vector.broadcast %cst_16 : f32 to vector<8x128xf32>
    %51 = arith.addf %50, %49 : vector<8x128xf32>
    %52 = arith.divf %50, %51 : vector<8x128xf32>
    %53 = vector.extract_strided_slice %40 {offsets = [0, 256], sizes = [8, 128], strides = [1, 1]} : vector<8x512xf32> to vector<8x128xf32>
    %54 = math.tanh %53 : vector<8x128xf32>
    %55 = vector.extract_strided_slice %40 {offsets = [0, 384], sizes = [8, 128], strides = [1, 1]} : vector<8x512xf32> to vector<8x128xf32>
    %56 = arith.negf %55 : vector<8x128xf32>
    %57 = math.exp %56 : vector<8x128xf32>
    %cst_17 = arith.constant 1.000000e+00 : f32
    %58 = vector.broadcast %cst_17 : f32 to vector<8x128xf32>
    %59 = arith.addf %58, %57 : vector<8x128xf32>
    %60 = arith.divf %58, %59 : vector<8x128xf32>
    %61 = arith.mulf %52, %33 : vector<8x128xf32>
    %62 = arith.mulf %46, %54 : vector<8x128xf32>
    %63 = arith.addf %61, %62 : vector<8x128xf32>
    %64 = math.tanh %63 : vector<8x128xf32>
    %65 = arith.mulf %60, %64 : vector<8x128xf32>
    %c2_i32 = arith.constant 2 : i32
    %66 = arith.index_cast %c2_i32 : i32 to index
    %c0_18 = arith.constant 0 : index
    %c0_19 = arith.constant 0 : index
    %67 = vector.load %arg1[%66, %c0_18, %c0_19] : memref<8x8x512xf32, #tpu.memory_space<vmem>>, vector<1x8x512xf32>
    %68 = vector.shape_cast %67 : vector<1x8x512xf32> to vector<8x512xf32>
    %cst_20 = arith.constant dense<0.000000e+00> : vector<8x512xf32>
    %69 = tpu.matmul %65, %3, %cst_20 {dimension_numbers = #tpu.dot_dimension_numbers<[1], [0], [0], [1], [0, 0, 1, 1], [], []>} : vector<8x128xf32>, vector<128x512xf32>, vector<8x512xf32> -> vector<8x512xf32>
    %70 = arith.addf %68, %69 : vector<8x512xf32>
    %71 = vector.extract_strided_slice %70 {offsets = [0, 0], sizes = [8, 128], strides = [1, 1]} : vector<8x512xf32> to vector<8x128xf32>
    %72 = arith.negf %71 : vector<8x128xf32>
    %73 = math.exp %72 : vector<8x128xf32>
    %cst_21 = arith.constant 1.000000e+00 : f32
    %74 = vector.broadcast %cst_21 : f32 to vector<8x128xf32>
    %75 = arith.addf %74, %73 : vector<8x128xf32>
    %76 = arith.divf %74, %75 : vector<8x128xf32>
    %77 = vector.extract_strided_slice %70 {offsets = [0, 128], sizes = [8, 128], strides = [1, 1]} : vector<8x512xf32> to vector<8x128xf32>
    %78 = arith.negf %77 : vector<8x128xf32>
    %79 = math.exp %78 : vector<8x128xf32>
    %cst_22 = arith.constant 1.000000e+00 : f32
    %80 = vector.broadcast %cst_22 : f32 to vector<8x128xf32>
    %81 = arith.addf %80, %79 : vector<8x128xf32>
    %82 = arith.divf %80, %81 : vector<8x128xf32>
    %83 = vector.extract_strided_slice %70 {offsets = [0, 256], sizes = [8, 128], strides = [1, 1]} : vector<8x512xf32> to vector<8x128xf32>
    %84 = math.tanh %83 : vector<8x128xf32>
    %85 = vector.extract_strided_slice %70 {offsets = [0, 384], sizes = [8, 128], strides = [1, 1]} : vector<8x512xf32> to vector<8x128xf32>
    %86 = arith.negf %85 : vector<8x128xf32>
    %87 = math.exp %86 : vector<8x128xf32>
    %cst_23 = arith.constant 1.000000e+00 : f32
    %88 = vector.broadcast %cst_23 : f32 to vector<8x128xf32>
    %89 = arith.addf %88, %87 : vector<8x128xf32>
    %90 = arith.divf %88, %89 : vector<8x128xf32>
    %91 = arith.mulf %82, %63 : vector<8x128xf32>
    %92 = arith.mulf %76, %84 : vector<8x128xf32>
    %93 = arith.addf %91, %92 : vector<8x128xf32>
    %94 = math.tanh %93 : vector<8x128xf32>
    %95 = arith.mulf %90, %94 : vector<8x128xf32>
    %c3_i32 = arith.constant 3 : i32
    %96 = arith.index_cast %c3_i32 : i32 to index
    %c0_24 = arith.constant 0 : index
    %c0_25 = arith.constant 0 : index
    %97 = vector.load %arg1[%96, %c0_24, %c0_25] : memref<8x8x512xf32, #tpu.memory_space<vmem>>, vector<1x8x512xf32>
    %98 = vector.shape_cast %97 : vector<1x8x512xf32> to vector<8x512xf32>
    %cst_26 = arith.constant dense<0.000000e+00> : vector<8x512xf32>
    %99 = tpu.matmul %95, %3, %cst_26 {dimension_numbers = #tpu.dot_dimension_numbers<[1], [0], [0], [1], [0, 0, 1, 1], [], []>} : vector<8x128xf32>, vector<128x512xf32>, vector<8x512xf32> -> vector<8x512xf32>
    %100 = arith.addf %98, %99 : vector<8x512xf32>
    %101 = vector.extract_strided_slice %100 {offsets = [0, 0], sizes = [8, 128], strides = [1, 1]} : vector<8x512xf32> to vector<8x128xf32>
    %102 = arith.negf %101 : vector<8x128xf32>
    %103 = math.exp %102 : vector<8x128xf32>
    %cst_27 = arith.constant 1.000000e+00 : f32
    %104 = vector.broadcast %cst_27 : f32 to vector<8x128xf32>
    %105 = arith.addf %104, %103 : vector<8x128xf32>
    %106 = arith.divf %104, %105 : vector<8x128xf32>
    %107 = vector.extract_strided_slice %100 {offsets = [0, 128], sizes = [8, 128], strides = [1, 1]} : vector<8x512xf32> to vector<8x128xf32>
    %108 = arith.negf %107 : vector<8x128xf32>
    %109 = math.exp %108 : vector<8x128xf32>
    %cst_28 = arith.constant 1.000000e+00 : f32
    %110 = vector.broadcast %cst_28 : f32 to vector<8x128xf32>
    %111 = arith.addf %110, %109 : vector<8x128xf32>
    %112 = arith.divf %110, %111 : vector<8x128xf32>
    %113 = vector.extract_strided_slice %100 {offsets = [0, 256], sizes = [8, 128], strides = [1, 1]} : vector<8x512xf32> to vector<8x128xf32>
    %114 = math.tanh %113 : vector<8x128xf32>
    %115 = vector.extract_strided_slice %100 {offsets = [0, 384], sizes = [8, 128], strides = [1, 1]} : vector<8x512xf32> to vector<8x128xf32>
    %116 = arith.negf %115 : vector<8x128xf32>
    %117 = math.exp %116 : vector<8x128xf32>
    %cst_29 = arith.constant 1.000000e+00 : f32
    %118 = vector.broadcast %cst_29 : f32 to vector<8x128xf32>
    %119 = arith.addf %118, %117 : vector<8x128xf32>
    %120 = arith.divf %118, %119 : vector<8x128xf32>
    %121 = arith.mulf %112, %93 : vector<8x128xf32>
    %122 = arith.mulf %106, %114 : vector<8x128xf32>
    %123 = arith.addf %121, %122 : vector<8x128xf32>
    %124 = math.tanh %123 : vector<8x128xf32>
    %125 = arith.mulf %120, %124 : vector<8x128xf32>
    %c4_i32 = arith.constant 4 : i32
    %126 = arith.index_cast %c4_i32 : i32 to index
    %c0_30 = arith.constant 0 : index
    %c0_31 = arith.constant 0 : index
    %127 = vector.load %arg1[%126, %c0_30, %c0_31] : memref<8x8x512xf32, #tpu.memory_space<vmem>>, vector<1x8x512xf32>
    %128 = vector.shape_cast %127 : vector<1x8x512xf32> to vector<8x512xf32>
    %cst_32 = arith.constant dense<0.000000e+00> : vector<8x512xf32>
    %129 = tpu.matmul %125, %3, %cst_32 {dimension_numbers = #tpu.dot_dimension_numbers<[1], [0], [0], [1], [0, 0, 1, 1], [], []>} : vector<8x128xf32>, vector<128x512xf32>, vector<8x512xf32> -> vector<8x512xf32>
    %130 = arith.addf %128, %129 : vector<8x512xf32>
    %131 = vector.extract_strided_slice %130 {offsets = [0, 0], sizes = [8, 128], strides = [1, 1]} : vector<8x512xf32> to vector<8x128xf32>
    %132 = arith.negf %131 : vector<8x128xf32>
    %133 = math.exp %132 : vector<8x128xf32>
    %cst_33 = arith.constant 1.000000e+00 : f32
    %134 = vector.broadcast %cst_33 : f32 to vector<8x128xf32>
    %135 = arith.addf %134, %133 : vector<8x128xf32>
    %136 = arith.divf %134, %135 : vector<8x128xf32>
    %137 = vector.extract_strided_slice %130 {offsets = [0, 128], sizes = [8, 128], strides = [1, 1]} : vector<8x512xf32> to vector<8x128xf32>
    %138 = arith.negf %137 : vector<8x128xf32>
    %139 = math.exp %138 : vector<8x128xf32>
    %cst_34 = arith.constant 1.000000e+00 : f32
    %140 = vector.broadcast %cst_34 : f32 to vector<8x128xf32>
    %141 = arith.addf %140, %139 : vector<8x128xf32>
    %142 = arith.divf %140, %141 : vector<8x128xf32>
    %143 = vector.extract_strided_slice %130 {offsets = [0, 256], sizes = [8, 128], strides = [1, 1]} : vector<8x512xf32> to vector<8x128xf32>
    %144 = math.tanh %143 : vector<8x128xf32>
    %145 = vector.extract_strided_slice %130 {offsets = [0, 384], sizes = [8, 128], strides = [1, 1]} : vector<8x512xf32> to vector<8x128xf32>
    %146 = arith.negf %145 : vector<8x128xf32>
    %147 = math.exp %146 : vector<8x128xf32>
    %cst_35 = arith.constant 1.000000e+00 : f32
    %148 = vector.broadcast %cst_35 : f32 to vector<8x128xf32>
    %149 = arith.addf %148, %147 : vector<8x128xf32>
    %150 = arith.divf %148, %149 : vector<8x128xf32>
    %151 = arith.mulf %142, %123 : vector<8x128xf32>
    %152 = arith.mulf %136, %144 : vector<8x128xf32>
    %153 = arith.addf %151, %152 : vector<8x128xf32>
    %154 = math.tanh %153 : vector<8x128xf32>
    %155 = arith.mulf %150, %154 : vector<8x128xf32>
    %c5_i32 = arith.constant 5 : i32
    %156 = arith.index_cast %c5_i32 : i32 to index
    %c0_36 = arith.constant 0 : index
    %c0_37 = arith.constant 0 : index
    %157 = vector.load %arg1[%156, %c0_36, %c0_37] : memref<8x8x512xf32, #tpu.memory_space<vmem>>, vector<1x8x512xf32>
    %158 = vector.shape_cast %157 : vector<1x8x512xf32> to vector<8x512xf32>
    %cst_38 = arith.constant dense<0.000000e+00> : vector<8x512xf32>
    %159 = tpu.matmul %155, %3, %cst_38 {dimension_numbers = #tpu.dot_dimension_numbers<[1], [0], [0], [1], [0, 0, 1, 1], [], []>} : vector<8x128xf32>, vector<128x512xf32>, vector<8x512xf32> -> vector<8x512xf32>
    %160 = arith.addf %158, %159 : vector<8x512xf32>
    %161 = vector.extract_strided_slice %160 {offsets = [0, 0], sizes = [8, 128], strides = [1, 1]} : vector<8x512xf32> to vector<8x128xf32>
    %162 = arith.negf %161 : vector<8x128xf32>
    %163 = math.exp %162 : vector<8x128xf32>
    %cst_39 = arith.constant 1.000000e+00 : f32
    %164 = vector.broadcast %cst_39 : f32 to vector<8x128xf32>
    %165 = arith.addf %164, %163 : vector<8x128xf32>
    %166 = arith.divf %164, %165 : vector<8x128xf32>
    %167 = vector.extract_strided_slice %160 {offsets = [0, 128], sizes = [8, 128], strides = [1, 1]} : vector<8x512xf32> to vector<8x128xf32>
    %168 = arith.negf %167 : vector<8x128xf32>
    %169 = math.exp %168 : vector<8x128xf32>
    %cst_40 = arith.constant 1.000000e+00 : f32
    %170 = vector.broadcast %cst_40 : f32 to vector<8x128xf32>
    %171 = arith.addf %170, %169 : vector<8x128xf32>
    %172 = arith.divf %170, %171 : vector<8x128xf32>
    %173 = vector.extract_strided_slice %160 {offsets = [0, 256], sizes = [8, 128], strides = [1, 1]} : vector<8x512xf32> to vector<8x128xf32>
    %174 = math.tanh %173 : vector<8x128xf32>
    %175 = vector.extract_strided_slice %160 {offsets = [0, 384], sizes = [8, 128], strides = [1, 1]} : vector<8x512xf32> to vector<8x128xf32>
    %176 = arith.negf %175 : vector<8x128xf32>
    %177 = math.exp %176 : vector<8x128xf32>
    %cst_41 = arith.constant 1.000000e+00 : f32
    %178 = vector.broadcast %cst_41 : f32 to vector<8x128xf32>
    %179 = arith.addf %178, %177 : vector<8x128xf32>
    %180 = arith.divf %178, %179 : vector<8x128xf32>
    %181 = arith.mulf %172, %153 : vector<8x128xf32>
    %182 = arith.mulf %166, %174 : vector<8x128xf32>
    %183 = arith.addf %181, %182 : vector<8x128xf32>
    %184 = math.tanh %183 : vector<8x128xf32>
    %185 = arith.mulf %180, %184 : vector<8x128xf32>
    %c6_i32 = arith.constant 6 : i32
    %186 = arith.index_cast %c6_i32 : i32 to index
    %c0_42 = arith.constant 0 : index
    %c0_43 = arith.constant 0 : index
    %187 = vector.load %arg1[%186, %c0_42, %c0_43] : memref<8x8x512xf32, #tpu.memory_space<vmem>>, vector<1x8x512xf32>
    %188 = vector.shape_cast %187 : vector<1x8x512xf32> to vector<8x512xf32>
    %cst_44 = arith.constant dense<0.000000e+00> : vector<8x512xf32>
    %189 = tpu.matmul %185, %3, %cst_44 {dimension_numbers = #tpu.dot_dimension_numbers<[1], [0], [0], [1], [0, 0, 1, 1], [], []>} : vector<8x128xf32>, vector<128x512xf32>, vector<8x512xf32> -> vector<8x512xf32>
    %190 = arith.addf %188, %189 : vector<8x512xf32>
    %191 = vector.extract_strided_slice %190 {offsets = [0, 0], sizes = [8, 128], strides = [1, 1]} : vector<8x512xf32> to vector<8x128xf32>
    %192 = arith.negf %191 : vector<8x128xf32>
    %193 = math.exp %192 : vector<8x128xf32>
    %cst_45 = arith.constant 1.000000e+00 : f32
    %194 = vector.broadcast %cst_45 : f32 to vector<8x128xf32>
    %195 = arith.addf %194, %193 : vector<8x128xf32>
    %196 = arith.divf %194, %195 : vector<8x128xf32>
    %197 = vector.extract_strided_slice %190 {offsets = [0, 128], sizes = [8, 128], strides = [1, 1]} : vector<8x512xf32> to vector<8x128xf32>
    %198 = arith.negf %197 : vector<8x128xf32>
    %199 = math.exp %198 : vector<8x128xf32>
    %cst_46 = arith.constant 1.000000e+00 : f32
    %200 = vector.broadcast %cst_46 : f32 to vector<8x128xf32>
    %201 = arith.addf %200, %199 : vector<8x128xf32>
    %202 = arith.divf %200, %201 : vector<8x128xf32>
    %203 = vector.extract_strided_slice %190 {offsets = [0, 256], sizes = [8, 128], strides = [1, 1]} : vector<8x512xf32> to vector<8x128xf32>
    %204 = math.tanh %203 : vector<8x128xf32>
    %205 = vector.extract_strided_slice %190 {offsets = [0, 384], sizes = [8, 128], strides = [1, 1]} : vector<8x512xf32> to vector<8x128xf32>
    %206 = arith.negf %205 : vector<8x128xf32>
    %207 = math.exp %206 : vector<8x128xf32>
    %cst_47 = arith.constant 1.000000e+00 : f32
    %208 = vector.broadcast %cst_47 : f32 to vector<8x128xf32>
    %209 = arith.addf %208, %207 : vector<8x128xf32>
    %210 = arith.divf %208, %209 : vector<8x128xf32>
    %211 = arith.mulf %202, %183 : vector<8x128xf32>
    %212 = arith.mulf %196, %204 : vector<8x128xf32>
    %213 = arith.addf %211, %212 : vector<8x128xf32>
    %214 = math.tanh %213 : vector<8x128xf32>
    %215 = arith.mulf %210, %214 : vector<8x128xf32>
    %c7_i32 = arith.constant 7 : i32
    %216 = arith.index_cast %c7_i32 : i32 to index
    %c0_48 = arith.constant 0 : index
    %c0_49 = arith.constant 0 : index
    %217 = vector.load %arg1[%216, %c0_48, %c0_49] : memref<8x8x512xf32, #tpu.memory_space<vmem>>, vector<1x8x512xf32>
    %218 = vector.shape_cast %217 : vector<1x8x512xf32> to vector<8x512xf32>
    %cst_50 = arith.constant dense<0.000000e+00> : vector<8x512xf32>
    %219 = tpu.matmul %215, %3, %cst_50 {dimension_numbers = #tpu.dot_dimension_numbers<[1], [0], [0], [1], [0, 0, 1, 1], [], []>} : vector<8x128xf32>, vector<128x512xf32>, vector<8x512xf32> -> vector<8x512xf32>
    %220 = arith.addf %218, %219 : vector<8x512xf32>
    %221 = vector.extract_strided_slice %220 {offsets = [0, 0], sizes = [8, 128], strides = [1, 1]} : vector<8x512xf32> to vector<8x128xf32>
    %222 = arith.negf %221 : vector<8x128xf32>
    %223 = math.exp %222 : vector<8x128xf32>
    %cst_51 = arith.constant 1.000000e+00 : f32
    %224 = vector.broadcast %cst_51 : f32 to vector<8x128xf32>
    %225 = arith.addf %224, %223 : vector<8x128xf32>
    %226 = arith.divf %224, %225 : vector<8x128xf32>
    %227 = vector.extract_strided_slice %220 {offsets = [0, 128], sizes = [8, 128], strides = [1, 1]} : vector<8x512xf32> to vector<8x128xf32>
    %228 = arith.negf %227 : vector<8x128xf32>
    %229 = math.exp %228 : vector<8x128xf32>
    %cst_52 = arith.constant 1.000000e+00 : f32
    %230 = vector.broadcast %cst_52 : f32 to vector<8x128xf32>
    %231 = arith.addf %230, %229 : vector<8x128xf32>
    %232 = arith.divf %230, %231 : vector<8x128xf32>
    %233 = vector.extract_strided_slice %220 {offsets = [0, 256], sizes = [8, 128], strides = [1, 1]} : vector<8x512xf32> to vector<8x128xf32>
    %234 = math.tanh %233 : vector<8x128xf32>
    %235 = vector.extract_strided_slice %220 {offsets = [0, 384], sizes = [8, 128], strides = [1, 1]} : vector<8x512xf32> to vector<8x128xf32>
    %236 = arith.negf %235 : vector<8x128xf32>
    %237 = math.exp %236 : vector<8x128xf32>
    %cst_53 = arith.constant 1.000000e+00 : f32
    %238 = vector.broadcast %cst_53 : f32 to vector<8x128xf32>
    %239 = arith.addf %238, %237 : vector<8x128xf32>
    %240 = arith.divf %238, %239 : vector<8x128xf32>
    %241 = arith.mulf %232, %213 : vector<8x128xf32>
    %242 = arith.mulf %226, %234 : vector<8x128xf32>
    %243 = arith.addf %241, %242 : vector<8x128xf32>
    %244 = math.tanh %243 : vector<8x128xf32>
    %245 = arith.mulf %240, %244 : vector<8x128xf32>
    %c8_i32 = arith.constant 8 : i32
    %c0_54 = arith.constant 0 : index
    %c0_55 = arith.constant 0 : index
    %246 = vector.load %arg6[%c0_54, %c0_55] : memref<8x128xf32, #tpu.memory_space<vmem>>, vector<8x128xf32>
    tpu.vector_store %arg6[%c0_54, %c0_55], %245 {strides = array<i32>} : memref<8x128xf32, #tpu.memory_space<vmem>>, vector<8x128xf32>,
    %c0_56 = arith.constant 0 : index
    %c0_57 = arith.constant 0 : index
    %247 = vector.load %arg7[%c0_56, %c0_57] : memref<8x128xf32, #tpu.memory_space<vmem>>, vector<8x128xf32>
    tpu.vector_store %arg7[%c0_56, %c0_57], %243 {strides = array<i32>} : memref<8x128xf32, #tpu.memory_space<vmem>>, vector<8x128xf32>,
    %c0_i32_58 = arith.constant 0 : i32
    %248 = arith.cmpi eq, %arg0, %c0_i32_58 : i32
    %249 = arith.extui %248 : i1 to i32
    %c0_i32_59 = arith.constant 0 : i32
    %250 = arith.cmpi ne, %249, %c0_i32_59 : i32
    scf.if %250 {
      %c0_60 = arith.constant 0 : index
      %c0_61 = arith.constant 0 : index
      %251 = vector.load %arg3[%c0_60, %c0_61] : memref<128x1xf32, #tpu.memory_space<vmem>>, vector<128x1xf32>
      %cst_62 = arith.constant dense<0.000000e+00> : vector<8x1xf32>
      %252 = tpu.matmul %245, %251, %cst_62 {dimension_numbers = #tpu.dot_dimension_numbers<[1], [0], [0], [1], [0, 0, 1, 1], [], []>} : vector<8x128xf32>, vector<128x1xf32>, vector<8x1xf32> -> vector<8x1xf32>
      %c0_63 = arith.constant 0 : index
      %c0_64 = arith.constant 0 : index
      %253 = vector.load %arg4[%c0_63, %c0_64] : memref<1x1xf32, #tpu.memory_space<vmem>>, vector<1x1xf32>
      %254 = vector.broadcast %253 : vector<1x1xf32> to vector<8x1xf32>
      %255 = arith.addf %252, %254 : vector<8x1xf32>
      %256 = arith.negf %255 : vector<8x1xf32>
      %257 = math.exp %256 : vector<8x1xf32>
      %cst_65 = arith.constant 1.000000e+00 : f32
      %258 = vector.broadcast %cst_65 : f32 to vector<8x1xf32>
      %259 = arith.addf %258, %257 : vector<8x1xf32>
      %260 = arith.divf %258, %259 : vector<8x1xf32>
      %c0_66 = arith.constant 0 : index
      %c0_67 = arith.constant 0 : index
      %261 = vector.load %arg5[%c0_66, %c0_67] : memref<8x1xf32, #tpu.memory_space<vmem>>, vector<8x1xf32>
      tpu.vector_store %arg5[%c0_66, %c0_67], %260 {strides = array<i32>} : memref<8x1xf32, #tpu.memory_space<vmem>>, vector<8x1xf32>,
    } else {
    }
    return
  }
  func.func @transform_0(%arg0: i32) -> (i32, i32, i32) {
    %c0_i32 = arith.constant 0 : i32
    %c0_i32_0 = arith.constant 0 : i32
    %c0_i32_1 = arith.constant 0 : i32
    return %arg0, %c0_i32, %c0_i32_0 : i32, i32, i32
  }
  func.func @transform_1(%arg0: i32) -> (i32, i32) {
    %c0_i32 = arith.constant 0 : i32
    %c0_i32_0 = arith.constant 0 : i32
    %c0_i32_1 = arith.constant 0 : i32
    return %c0_i32, %c0_i32_0 : i32, i32
  }
  func.func @transform_2(%arg0: i32) -> (i32, i32) {
    %c0_i32 = arith.constant 0 : i32
    %c0_i32_0 = arith.constant 0 : i32
    %c0_i32_1 = arith.constant 0 : i32
    return %c0_i32, %c0_i32_0 : i32, i32
  }
  func.func @transform_3(%arg0: i32) -> (i32, i32) {
    %c0_i32 = arith.constant 0 : i32
    %c0_i32_0 = arith.constant 0 : i32
    %c0_i32_1 = arith.constant 0 : i32
    return %c0_i32, %c0_i32_0 : i32, i32
  }
  func.func @transform_4(%arg0: i32) -> (i32, i32) {
    %c0_i32 = arith.constant 0 : i32
    %c0_i32_0 = arith.constant 0 : i32
    %c0_i32_1 = arith.constant 0 : i32
    return %c0_i32, %c0_i32_0 : i32, i32
  }
}

</mosaic_0001>

<bundles_post_ra>
// kernel: tpu_custom_call.1
= control target key start
LH: loop header
LB: loop body
LE: loop exit
PB: predicated region body
PF: predicated region fallthrough
CT: control target
= control target key end

     0   :  { %s2908_s0 = inlined_call_operand.hbm [shape: f32[8,8,512], index: 0, kind: input, shape index: {}]   ;;  %s2909_s1 = inlined_call_operand.hbm [shape: f32[128,512], index: 1, kind: input, shape index: {}]   ;;  %s2910_s2 = inlined_call_operand.vmem [shape: f32[128,1], index: 2, kind: input, shape index: {}]   ;;  %s2911_s3 = inlined_call_operand.<no memory space> [shape: f32[1,1], index: 3, kind: input, shape index: {}]   ;;  %s2912_s4 = inlined_call_operand.vmem [shape: f32[8,1], index: 4, kind: output, shape index: {}]  }
   0x1   :  { %v9_v0 = vstv %s2911_s3 }
   0x2   :  { %10 = vst [vmem:[#allocation4] sm:$0x1] %v9_v0 }
   0x3   :  { %11 = vsyncpa [#allocation6], 0 }
   0x4   :  { %12 = vsyncpa [#allocation8], 0  ;;  %s2431_s17 = smov [#allocation5]   ;;  %s2383_s21 = scalar_lea.hbm %s2908_s0, 4096 }
   0x5   :  { %s18_s18 = sshll.u32 %s2431_s17, 4  ;;  %p2384_p0 = scmp.ne.s32.totalorder %s2908_s0, %s2383_s21  ;;  %s19_s18 = int_to_ptr.vmem [resolvable:$true] %s18_s18 }
   0x6   :  { %p2387_p1 = scmp.lt.u32.totalorder %s2383_s21, %s2908_s0 }
   0x8   :  { %p2389_p2 = pnand %p2387_p1, %p2384_p0 }
   0xa   :  { %2392 = shalt.err (!%p2389_p2)
}
   0xb   :  { %s2393_s3 = scalar_lea.vmem %s19_s18, 4096  ;;  %p2398_p4 = scmp.lt.s32.totalorder %s19_s18, %s19_s18 }
   0xc   :  { %p2394_p3 = scmp.ne.s32.totalorder %s19_s18, %s2393_s3  ;;  %p2399_p5 = scmp.lt.s32.totalorder %s2393_s3, %s2393_s3 }
   0xe   :  { %p2400_p6 = por %p2399_p5, %p2398_p4 }
  0x10   :  { %p2401_p7 = pnand %p2400_p6, %p2394_p3 }
  0x12   :  { %2404 = shalt.err (!%p2401_p7)
}
  0x13   :  { %s2432_s26 = smov 512   ;;  %s2433_s27 = smov 32  }
  0x14   :  { %24 = dma.hbm_to_vmem [thread:$0]  %s2908_s0, 4096, %s19_s18, [#allocation6], %s2432_s26, %s2432_s26, %s2433_s27  }
  0x15   :  { %s2434_s30 = smov [#allocation7]   ;;  %s2405_s8 = scalar_lea.hbm %s2909_s1, 8192 }
  0x16   :  { %s30_s5 = sshll.u32 %s2434_s30, 4  ;;  %p2406_p8 = scmp.ne.s32.totalorder %s2909_s1, %s2405_s8  ;;  %s31_s5 = int_to_ptr.vmem [resolvable:$true] %s30_s5 }
  0x17   :  { %p2409_p9 = scmp.lt.u32.totalorder %s2405_s8, %s2909_s1 }
  0x19   :  { %p2411_p10 = pnand %p2409_p9, %p2406_p8 }
  0x1b   :  { %2414 = shalt.err (!%p2411_p10)
}
  0x1c   :  { %s2415_s13 = scalar_lea.vmem %s31_s5, 8192  ;;  %p2420_p12 = scmp.lt.s32.totalorder %s31_s5, %s31_s5 }
  0x1d   :  { %p2416_p11 = scmp.ne.s32.totalorder %s31_s5, %s2415_s13  ;;  %p2421_p13 = scmp.lt.s32.totalorder %s2415_s13, %s2415_s13 }
  0x1f   :  { %p2422_p0 = por %p2421_p13, %p2420_p12 }
  0x21   :  { %p2423_p1 = pnand %p2422_p0, %p2416_p11 }
  0x23   :  { %2426 = shalt.err (!%p2423_p1)
}
  0x24   :  { %36 = dma.hbm_to_vmem [thread:$0]  %s2909_s1, 8192, %s31_s5, [#allocation8], %s2432_s26, %s2432_s26, %s2433_s27  }
  0x25   :  { %2427 = dma.done.wait [#allocation6], 4096  }
  0x26   :  { %2428 = vsyncadd [#allocation6], 4294963200 }
  0x27   :  { %2429 = dma.done.wait [#allocation8], 8192  }
  0x28   :  { %2430 = vsyncadd [#allocation8], 4294959104  ;;  %v2435_v1 = vmov 0.0   ;;  %v54_v2 = vld [vmem:[#allocation7 + $0x8] sm:$0xff]  ;;  %v53_v4 = vld [vmem:[#allocation7] sm:$0xff]  ;;  %vm2437_vm0 = vmmov 0  }
  0x29   :  { %187 = vmatprep.mubr.f32.mxu0 %v2435_v1  ;;  %258 = vmatprep.mubr.f32.mxu1 %v2435_v1  ;;  %v58_v3 = vld [vmem:[#allocation7 + $0x28] sm:$0xff]  ;;  %v57_v6 = vld [vmem:[#allocation7 + $0x20] sm:$0xff]  ;;  %v56_v20 = vld [vmem:[#allocation7 + $0x18] sm:$0xff]  ;;  %vm1622_vm1 = vcmask 7168  }
  0x2a   :  { %v2492_v5 = vpack.c.bf16 %v58_v3, %v54_v2  ;;  %v62_v7 = vld [vmem:[#allocation7 + $0x48] sm:$0xff]  ;;  %v2494_v9 = vpack.c.bf16 %v57_v6, %v53_v4  ;;  %v61_v11 = vld [vmem:[#allocation7 + $0x40] sm:$0xff]  ;;  %v60_v21 = vld [vmem:[#allocation7 + $0x38] sm:$0xff] }
  0x2b   :  { %v66_v8 = vld [vmem:[#allocation7 + $0x68] sm:$0xff]  ;;  %v65_v12 = vld [vmem:[#allocation7 + $0x60] sm:$0xff]  ;;  %v2505_v23 = vpack.c.bf16 %v60_v21, %v56_v20  ;;  %v55_v24 = vld [vmem:[#allocation7 + $0x10] sm:$0xff] }
  0x2c   :  { %v2496_v10 = vpack.c.bf16 %v66_v8, %v62_v7  ;;  %v70_v13 = vld [vmem:[#allocation7 + $0x88] sm:$0xff]  ;;  %1709 = vmatprep.subr.bf16.mxu0 %v2492_v5  ;;  %v2500_v15 = vpack.c.bf16 %v65_v12, %v61_v11  ;;  %v69_v16 = vld [vmem:[#allocation7 + $0x80] sm:$0xff]  ;;  %v59_v25 = vld [vmem:[#allocation7 + $0x30] sm:$0xff] }
  0x2d   :  { %v74_v14 = vld [vmem:[#allocation7 + $0xa8] sm:$0xff]  ;;  %1711 = vmatpush1.bf16.msra.mxu0 %v2494_v9  ;;  %v73_v17 = vld [vmem:[#allocation7 + $0xa0] sm:$0xff]  ;;  %v2507_v26 = vpack.c.bf16 %v59_v25, %v55_v24  ;;  %1741 = vmatprep.subr.bf16.mxu1 %v2505_v23  ;;  %v64_v28 = vld [vmem:[#allocation7 + $0x58] sm:$0xff] }
  0x2e   :  { %1713 = vmatprep.subr.bf16.mxu0 %v2496_v10  ;;  %v2503_v18 = vpack.c.bf16 %v74_v14, %v70_v13  ;;  %v78_v19 = vld [vmem:[#allocation7 + $0xc8] sm:$0xff]  ;;  %v2510_v27 = vpack.c.bf16 %v73_v17, %v69_v16  ;;  %v68_v29 = vld [vmem:[#allocation7 + $0x78] sm:$0xff]  ;;  %v63_v30 = vld [vmem:[#allocation7 + $0x50] sm:$0xff] }
  0x2f   :  { %v82_v22 = vld [vmem:[#allocation7 + $0xe8] sm:$0xff]  ;;  %v77_v32 = vld [vmem:[#allocation7 + $0xc0] sm:$0xff]  ;;  %1743 = vmatpush1.bf16.msra.mxu1 %v2507_v26  ;;  %v2517_v34 = vpack.c.bf16 %v68_v29, %v64_v28  ;;  %v67_v35 = vld [vmem:[#allocation7 + $0x70] sm:$0xff] }
  0x30   :  { %v2514_v31 = vpack.c.bf16 %v82_v22, %v78_v19  ;;  %v81_v33 = vld [vmem:[#allocation7 + $0xe0] sm:$0xff]  ;;  %v86_v36 = vld [vmem:[#allocation7 + $0x108] sm:$0xff]  ;;  %v2519_v38 = vpack.c.bf16 %v67_v35, %v63_v30  ;;  %v72_v39 = vld [vmem:[#allocation7 + $0x98] sm:$0xff] }
  0x31   :  { %1715 = vmatpush1.bf16.msra.mxu0 %v2500_v15  ;;  %v90_v37 = vld [vmem:[#allocation7 + $0x128] sm:$0xff]  ;;  %1745 = vmatprep.subr.bf16.mxu1 %v2517_v34  ;;  %v76_v40 = vld [vmem:[#allocation7 + $0xb8] sm:$0xff]  ;;  %v71_v41 = vld [vmem:[#allocation7 + $0x90] sm:$0xff]  ;;  %v2523_v43 = vpack.c.bf16 %v81_v33, %v77_v32 }
  0x32   :  { %1717 = vmatprep.subr.bf16.mxu0 %v2503_v18  ;;  %v75_v42 = vld [vmem:[#allocation7 + $0xb0] sm:$0xff]  ;;  %v85_v44 = vld [vmem:[#allocation7 + $0x100] sm:$0xff]  ;;  %v2525_v46 = vpack.c.bf16 %v76_v40, %v72_v39  ;;  %v2528_v47 = vpack.c.bf16 %v90_v37, %v86_v36  ;;  %v94_v48 = vld [vmem:[#allocation7 + $0x148] sm:$0xff] }
  0x33   :  { %v89_v45 = vld [vmem:[#allocation7 + $0x120] sm:$0xff]  ;;  %1747 = vmatpush1.bf16.msra.mxu1 %v2519_v38  ;;  %v2531_v49 = vpack.c.bf16 %v75_v42, %v71_v41  ;;  %v80_v50 = vld [vmem:[#allocation7 + $0xd8] sm:$0xff]  ;;  %v98_v52 = vld [vmem:[#allocation7 + $0x168] sm:$0xff] }
  0x34   :  { %v84_v51 = vld [vmem:[#allocation7 + $0xf8] sm:$0xff]  ;;  %1749 = vmatprep.subr.bf16.mxu1 %v2525_v46  ;;  %v79_v54 = vld [vmem:[#allocation7 + $0xd0] sm:$0xff]  ;;  %v2537_v56 = vpack.c.bf16 %v89_v45, %v85_v44  ;;  %v2540_v59 = vpack.c.bf16 %v98_v52, %v94_v48  ;;  %v93_v60 = vld [vmem:[#allocation7 + $0x140] sm:$0xff] }
  0x35   :  { %1719 = vmatpush1.bf16.msra.mxu0 %v2510_v27  ;;  %v2534_v53 = vpack.c.bf16 %v84_v51, %v80_v50  ;;  %v83_v55 = vld [vmem:[#allocation7 + $0xf0] sm:$0xff]  ;;  %v88_v57 = vld [vmem:[#allocation7 + $0x118] sm:$0xff]  ;;  %v97_v61 = vld [vmem:[#allocation7 + $0x160] sm:$0xff] }
  0x36   :  { %1721 = vmatprep.subr.bf16.mxu0 %v2514_v31  ;;  %v92_v58 = vld [vmem:[#allocation7 + $0x138] sm:$0xff]  ;;  %v102_v62 = vld [vmem:[#allocation7 + $0x188] sm:$0xff]  ;;  %v2543_v63 = vpack.c.bf16 %v83_v55, %v79_v54  ;;  %v87_v3 = vld [vmem:[#allocation7 + $0x110] sm:$0xff]  ;;  %v2549_v8 = vpack.c.bf16 %v97_v61, %v93_v60 }
  0x37   :  { %1751 = vmatpush1.bf16.msra.mxu1 %v2531_v49  ;;  %v106_v0 = vld [vmem:[#allocation7 + $0x1a8] sm:$0xff]  ;;  %v2546_v2 = vpack.c.bf16 %v92_v58, %v88_v57  ;;  %v91_v4 = vld [vmem:[#allocation7 + $0x130] sm:$0xff]  ;;  %v96_v6 = vld [vmem:[#allocation7 + $0x158] sm:$0xff] }
  0x38   :  { %1753 = vmatprep.subr.bf16.mxu1 %v2534_v53  ;;  %v100_v7 = vld [vmem:[#allocation7 + $0x178] sm:$0xff]  ;;  %v2552_v11 = vpack.c.bf16 %v106_v0, %v102_v62  ;;  %v101_v12 = vld [vmem:[#allocation7 + $0x180] sm:$0xff]  ;;  %v110_v14 = vld [vmem:[#allocation7 + $0x1c8] sm:$0xff]  ;;  %v2555_v16 = vpack.c.bf16 %v91_v4, %v87_v3 }
  0x39   :  { %1723 = vmatpush1.bf16.msra.mxu0 %v2523_v43  ;;  %v105_v13 = vld [vmem:[#allocation7 + $0x1a0] sm:$0xff]  ;;  %v114_v17 = vld [vmem:[#allocation7 + $0x1e8] sm:$0xff]  ;;  %v2558_v19 = vpack.c.bf16 %v100_v7, %v96_v6  ;;  %v95_v20 = vld [vmem:[#allocation7 + $0x150] sm:$0xff] }
  0x3a   :  { %1725 = vmatprep.subr.bf16.mxu0 %v2528_v47  ;;  %v99_v21 = vld [vmem:[#allocation7 + $0x170] sm:$0xff]  ;;  %v104_v22 = vld [vmem:[#allocation7 + $0x198] sm:$0xff]  ;;  %v2561_v25 = vpack.c.bf16 %v105_v13, %v101_v12  ;;  %v2564_v28 = vpack.c.bf16 %v114_v17, %v110_v14  ;;  %v109_v29 = vld [vmem:[#allocation7 + $0x1c0] sm:$0xff] }
  0x3b   :  { %1755 = vmatpush1.bf16.msra.mxu1 %v2543_v63  ;;  %v108_v24 = vld [vmem:[#allocation7 + $0x1b8] sm:$0xff]  ;;  %v113_v30 = vld [vmem:[#allocation7 + $0x1e0] sm:$0xff]  ;;  %v2567_v32 = vpack.c.bf16 %v99_v21, %v95_v20  ;;  %v103_v35 = vld [vmem:[#allocation7 + $0x190] sm:$0xff] }
  0x3c   :  { %1757 = vmatprep.subr.bf16.mxu1 %v2546_v2  ;;  %v2570_v33 = vpack.c.bf16 %v108_v24, %v104_v22  ;;  %v107_v36 = vld [vmem:[#allocation7 + $0x1b0] sm:$0xff]  ;;  %v112_v37 = vld [vmem:[#allocation7 + $0x1d8] sm:$0xff]  ;;  %v2573_v40 = vpack.c.bf16 %v113_v30, %v109_v29  ;;  %v119_v50 = vld [vmem:[#allocation5] sm:$0xff] }
  0x3d   :  { %1727 = vmatpush1.bf16.msra.mxu0 %v2537_v56  ;;  %v116_v39 = vld [vmem:[#allocation7 + $0x1f8] sm:$0xff]  ;;  %v2577_v41 = vpack.c.bf16 %v107_v36, %v103_v35  ;;  %v111_v44 = vld [vmem:[#allocation7 + $0x1d0] sm:$0xff]  ;;  %v120_v51 = vld [vmem:[#allocation5 + $0x8] sm:$0xff] }
  0x3e   :  { %1729 = vmatprep.subr.bf16.mxu0 %v2540_v59  ;;  %v2580_v42 = vpack.c.bf16 %v116_v39, %v112_v37  ;;  %v115_v45 = vld [vmem:[#allocation7 + $0x1f0] sm:$0xff]  ;;  %v122_v61 = vld [vmem:[#allocation5 + $0x18] sm:$0xff] }
  0x3f   :  { %1759 = vmatpush1.bf16.msra.mxu1 %v2555_v16  ;;  %v2584_v48 = vpack.c.bf16 %v115_v45, %v111_v44  ;;  %v121_v4 = vld [vmem:[#allocation5 + $0x10] sm:$0xff]  ;;  %v294_v45 = vld [vmem:[#allocation5 + $0x20] sm:$0xff] }
  0x40   :  { %1761 = vmatprep.subr.bf16.mxu1 %v2558_v19 }
  0x41   :  { %1731 = vmatpush1.bf16.msra.mxu0 %v2549_v8 }
  0x42   :  { %1733 = vmatprep.subr.bf16.mxu0 %v2552_v11 }
  0x43   :  { %1763 = vmatpush1.bf16.msra.mxu1 %v2567_v32 }
  0x44   :  { %1765 = vmatprep.subr.bf16.mxu1 %v2570_v33 }
  0x45   :  { %1735 = vmatpush1.bf16.msra.mxu0 %v2561_v25 }
  0x46   :  { %1737 = vmatprep.subr.bf16.mxu0 %v2564_v28 }
  0x47   :  { %1767 = vmatpush1.bf16.msra.mxu1 %v2577_v41 }
  0x48   :  { %1769 = vmatprep.subr.bf16.mxu1 %v2580_v42 }
  0x49   :  { %1739 = vmatpush1.bf16.msra.mxu0 %v2573_v40 }
  0x4a   :  { %1773 = vmatprep.subr.bf16.mxu0 %v2492_v5 }
  0x4b   :  { %1771 = vmatpush1.bf16.msra.mxu1 %v2584_v48 }
  0x4c   :  { %188 = vmatmul.mubr.f32.vlgmr.msra.gmra.mrb[0].mxu0 %v2435_v1  ;;  %1805 = vmatprep.subr.bf16.mxu1 %v2505_v23 }
  0x4d   :  { %1775 = vmatpush1.bf16.msra.mxu0 %v2494_v9  ;;  %362 = vmatprep.mubr.f32.mxu0 %v2435_v1 }
  0x4e   :  { %1777 = vmatprep.subr.bf16.mxu0 %v2496_v10  ;;  %259 = vmatmul.mubr.f32.vlgmr.msra.gmra.mrb[0].mxu1 %v2435_v1 }
  0x4f   :  { %1807 = vmatpush1.bf16.msra.mxu1 %v2507_v26  ;;  %433 = vmatprep.mubr.f32.mxu1 %v2435_v1 }
  0x50   :  { %1809 = vmatprep.subr.bf16.mxu1 %v2517_v34 }
  0x51   :  { %1779 = vmatpush1.bf16.msra.mxu0 %v2500_v15 }
  0x52   :  { %1781 = vmatprep.subr.bf16.mxu0 %v2503_v18 }
  0x53   :  { %1811 = vmatpush1.bf16.msra.mxu1 %v2519_v38 }
  0x54   :  { %1813 = vmatprep.subr.bf16.mxu1 %v2525_v46 }
  0x55   :  { %1783 = vmatpush1.bf16.msra.mxu0 %v2510_v27 }
  0x56   :  { %1785 = vmatprep.subr.bf16.mxu0 %v2514_v31 }
  0x57   :  { %1815 = vmatpush1.bf16.msra.mxu1 %v2531_v49 }
  0x58   :  { %1817 = vmatprep.subr.bf16.mxu1 %v2534_v53 }
  0x59   :  { %1787 = vmatpush1.bf16.msra.mxu0 %v2523_v43 }
  0x5a   :  { %1789 = vmatprep.subr.bf16.mxu0 %v2528_v47 }
  0x5b   :  { %1819 = vmatpush1.bf16.msra.mxu1 %v2543_v63 }
  0x5c   :  { %1821 = vmatprep.subr.bf16.mxu1 %v2546_v2 }
  0x5d   :  { %1791 = vmatpush1.bf16.msra.mxu0 %v2537_v56 }
  0x5e   :  { %1793 = vmatprep.subr.bf16.mxu0 %v2540_v59 }
  0x5f   :  { %1823 = vmatpush1.bf16.msra.mxu1 %v2555_v16 }
  0x60   :  { %1825 = vmatprep.subr.bf16.mxu1 %v2558_v19 }
  0x61   :  { %1795 = vmatpush1.bf16.msra.mxu0 %v2549_v8 }
  0x62   :  { %1797 = vmatprep.subr.bf16.mxu0 %v2552_v11 }
  0x63   :  { %1827 = vmatpush1.bf16.msra.mxu1 %v2567_v32 }
  0x64   :  { %1829 = vmatprep.subr.bf16.mxu1 %v2570_v33 }
  0x65   :  { %1799 = vmatpush1.bf16.msra.mxu0 %v2561_v25 }
  0x66   :  { %1801 = vmatprep.subr.bf16.mxu0 %v2564_v28 }
  0x67   :  { %1831 = vmatpush1.bf16.msra.mxu1 %v2577_v41 }
  0x68   :  { %1833 = vmatprep.subr.bf16.mxu1 %v2580_v42 }
  0x69   :  { %1803 = vmatpush1.bf16.msra.mxu0 %v2573_v40 }
  0x6a   :  { %1837 = vmatprep.subr.bf16.mxu0 %v2492_v5 }
  0x6b   :  { %1835 = vmatpush1.bf16.msra.mxu1 %v2584_v48 }
  0x6c   :  { %1869 = vmatprep.subr.bf16.mxu1 %v2505_v23 }
 0x11f   :  { %v189_v52 = vpop.f32.mrb[0].mxu0 }
 0x120   :  { %v265_v54 = vadd.f32 %v189_v52, %v119_v50  ;;  %v191_v55 = vpop.f32.mrb[1].mxu0  ;;  %v295_v50 = vld [vmem:[#allocation5 + $0x28] sm:$0xff] }
 0x121   :  { %v266_v57 = vadd.f32 %v191_v55, %v120_v51  ;;  %v260_v62 = vpop.f32.mrb[0].mxu1 }
 0x122   :  { %v1630_v58 = vmul.f32 -1.442695, %v265_v54  ;;  %v262_v0 = vpop.f32.mrb[1].mxu1  ;;  %v267_v7 = vadd.f32 %v260_v62, %v121_v4  ;;  %v297_v62 = vld [vmem:[#allocation5 + $0x38] sm:$0xff] }
 0x123   :  { %v1631_v60 = vmul.f32 -1.442695, %v266_v57  ;;  %v268_v3 = vadd.f32 %v262_v0, %v122_v61 }
 0x124   :  { %2251 = vpow2.f32 %v1630_v58 }
 0x125   :  { %2253 = vpow2.f32 %v1631_v60  ;;  %v1632_v6 = vmul.f32 -1.442695, %v268_v3  ;;  %v296_v3 = vld [vmem:[#allocation5 + $0x30] sm:$0xff] }
 0x127   :  { %2255 = vpow2.f32 %v1632_v6 }
 0x128   :  { %2257 = vtanh.f32 %v267_v7 }
 0x12e   :  { %v2252_v12 = vpop.eup %2251 }
 0x12f   :  { %v2254_v13 = vpop.eup %2253  ;;  %v272_v14 = vadd.f32 1.0, %v2252_v12 }
 0x130   :  { %v278_v17 = vadd.f32 1.0, %v2254_v13 }
 0x131   :  { %2259 = vrcp.f32 %v272_v14  ;;  %v2256_v20 = vpop.eup %2255 }
 0x132   :  { %2261 = vrcp.f32 %v278_v17  ;;  %v2258_v21 = vpop.eup %2257  ;;  %v285_v24 = vadd.f32 1.0, %v2256_v20 }
 0x134   :  { %2263 = vrcp.f32 %v285_v24 }
 0x13b   :  { %v2260_v22 = vpop.eup %2259 }
 0x13c   :  { %v2262_v29 = vpop.eup %2261  ;;  %v289_v30 = vmul.f32 %v2260_v22, %v2258_v21 }
 0x13d   :  { %v288_v35 = vmul.f32 0.0, %v2262_v29 }
 0x13e   :  { %v2264_v37 = vpop.eup %2263 }
 0x13f   :  { %v2626_v36 = vadd.f32 %v289_v30, %v288_v35 }
 0x141   :  { %2265 = vtanh.f32 %v2626_v36 }
 0x14b   :  { %v2266_v39 = vpop.eup %2265 }
 0x14c   :  { %v292_v44 = vmul.f32 %v2266_v39, %v2264_v37 }
 0x14e   :  { %363 = vmatmul.mubr.f32.vlgmr.msra.gmra.mrb[2].mxu0 %v292_v44  ;;  %434 = vmatmul.mubr.f32.vlgmr.msra.gmra.mrb[2].mxu1 %v292_v44 }
 0x14f   :  { %1839 = vmatpush1.bf16.msra.mxu0 %v2494_v9  ;;  %1871 = vmatpush1.bf16.msra.mxu1 %v2507_v26 }
 0x150   :  { %1841 = vmatprep.subr.bf16.mxu0 %v2496_v10  ;;  %1873 = vmatprep.subr.bf16.mxu1 %v2517_v34 }
 0x151   :  { %537 = vmatprep.mubr.f32.mxu0 %v2435_v1  ;;  %608 = vmatprep.mubr.f32.mxu1 %v2435_v1 }
 0x153   :  { %1843 = vmatpush1.bf16.msra.mxu0 %v2500_v15  ;;  %1875 = vmatpush1.bf16.msra.mxu1 %v2519_v38 }
 0x154   :  { %1845 = vmatprep.subr.bf16.mxu0 %v2503_v18  ;;  %1877 = vmatprep.subr.bf16.mxu1 %v2525_v46 }
 0x157   :  { %1847 = vmatpush1.bf16.msra.mxu0 %v2510_v27  ;;  %1879 = vmatpush1.bf16.msra.mxu1 %v2531_v49 }
 0x158   :  { %1849 = vmatprep.subr.bf16.mxu0 %v2514_v31  ;;  %1881 = vmatprep.subr.bf16.mxu1 %v2534_v53 }
 0x15b   :  { %1851 = vmatpush1.bf16.msra.mxu0 %v2523_v43  ;;  %1883 = vmatpush1.bf16.msra.mxu1 %v2543_v63 }
 0x15c   :  { %1853 = vmatprep.subr.bf16.mxu0 %v2528_v47  ;;  %1885 = vmatprep.subr.bf16.mxu1 %v2546_v2 }
 0x15f   :  { %1855 = vmatpush1.bf16.msra.mxu0 %v2537_v56  ;;  %1887 = vmatpush1.bf16.msra.mxu1 %v2555_v16 }
 0x160   :  { %1857 = vmatprep.subr.bf16.mxu0 %v2540_v59  ;;  %1889 = vmatprep.subr.bf16.mxu1 %v2558_v19 }
 0x163   :  { %1859 = vmatpush1.bf16.msra.mxu0 %v2549_v8  ;;  %1891 = vmatpush1.bf16.msra.mxu1 %v2567_v32 }
 0x164   :  { %1861 = vmatprep.subr.bf16.mxu0 %v2552_v11  ;;  %1893 = vmatprep.subr.bf16.mxu1 %v2570_v33 }
 0x167   :  { %1863 = vmatpush1.bf16.msra.mxu0 %v2561_v25  ;;  %1895 = vmatpush1.bf16.msra.mxu1 %v2577_v41 }
 0x168   :  { %1865 = vmatprep.subr.bf16.mxu0 %v2564_v28  ;;  %1897 = vmatprep.subr.bf16.mxu1 %v2580_v42 }
 0x16b   :  { %1867 = vmatpush1.bf16.msra.mxu0 %v2573_v40  ;;  %1899 = vmatpush1.bf16.msra.mxu1 %v2584_v48 }
 0x16c   :  { %1901 = vmatprep.subr.bf16.mxu0 %v2492_v5  ;;  %1933 = vmatprep.subr.bf16.mxu1 %v2505_v23 }
 0x221   :  { %v364_v51 = vpop.f32.mrb[2].mxu0  ;;  %v435_v52 = vpop.f32.mrb[2].mxu1 }
 0x222   :  { %v440_v54 = vadd.f32 %v364_v51, %v294_v45  ;;  %v366_v55 = vpop.f32.mrb[3].mxu0  ;;  %v437_v57 = vpop.f32.mrb[3].mxu1  ;;  %v442_v6 = vadd.f32 %v435_v52, %v296_v3  ;;  %v470_v45 = vld [vmem:[#allocation5 + $0x48] sm:$0xff] }
 0x223   :  { %v441_v58 = vadd.f32 %v366_v55, %v295_v50  ;;  %v443_v0 = vadd.f32 %v437_v57, %v297_v62 }
 0x224   :  { %v1633_v60 = vmul.f32 -1.442695, %v440_v54 }
 0x225   :  { %v1634_v61 = vmul.f32 -1.442695, %v441_v58  ;;  %v1635_v4 = vmul.f32 -1.442695, %v443_v0  ;;  %v471_v0 = vld [vmem:[#allocation5 + $0x50] sm:$0xff] }
 0x226   :  { %2267 = vpow2.f32 %v1633_v60 }
 0x227   :  { %2269 = vpow2.f32 %v1634_v61  ;;  %v472_v61 = vld [vmem:[#allocation5 + $0x58] sm:$0xff] }
 0x228   :  { %2271 = vpow2.f32 %v1635_v4 }
 0x229   :  { %2273 = vtanh.f32 %v442_v6 }
 0x230   :  { %v2268_v7 = vpop.eup %2267 }
 0x231   :  { %v2270_v12 = vpop.eup %2269  ;;  %v447_v13 = vadd.f32 1.0, %v2268_v7 }
 0x232   :  { %v453_v14 = vadd.f32 1.0, %v2270_v12  ;;  %v2272_v17 = vpop.eup %2271 }
 0x233   :  { %2275 = vrcp.f32 %v447_v13  ;;  %v2274_v20 = vpop.eup %2273  ;;  %v460_v29 = vadd.f32 1.0, %v2272_v17 }
 0x234   :  { %2277 = vrcp.f32 %v453_v14 }
 0x235   :  { %2279 = vrcp.f32 %v460_v29 }
 0x23d   :  { %v2276_v21 = vpop.eup %2275 }
 0x23e   :  { %v2278_v22 = vpop.eup %2277  ;;  %v464_v24 = vmul.f32 %v2276_v21, %v2274_v20 }
 0x23f   :  { %v463_v30 = vmul.f32 %v2278_v22, %v2626_v36  ;;  %v2280_v37 = vpop.eup %2279  ;;  %v469_v36 = vld [vmem:[#allocation5 + $0x40] sm:$0xff] }
 0x241   :  { %v2664_v35 = vadd.f32 %v464_v24, %v463_v30 }
 0x243   :  { %2281 = vtanh.f32 %v2664_v35 }
 0x24d   :  { %v2282_v39 = vpop.eup %2281 }
 0x24e   :  { %v467_v44 = vmul.f32 %v2282_v39, %v2280_v37 }
 0x250   :  { %538 = vmatmul.mubr.f32.vlgmr.msra.gmra.mrb[4].mxu0 %v467_v44  ;;  %609 = vmatmul.mubr.f32.vlgmr.msra.gmra.mrb[4].mxu1 %v467_v44 }
 0x251   :  { %1903 = vmatpush1.bf16.msra.mxu0 %v2494_v9  ;;  %1935 = vmatpush1.bf16.msra.mxu1 %v2507_v26 }
 0x252   :  { %1905 = vmatprep.subr.bf16.mxu0 %v2496_v10  ;;  %1937 = vmatprep.subr.bf16.mxu1 %v2517_v34 }
 0x253   :  { %712 = vmatprep.mubr.f32.mxu0 %v2435_v1  ;;  %783 = vmatprep.mubr.f32.mxu1 %v2435_v1 }
 0x255   :  { %1907 = vmatpush1.bf16.msra.mxu0 %v2500_v15  ;;  %1939 = vmatpush1.bf16.msra.mxu1 %v2519_v38 }
 0x256   :  { %1909 = vmatprep.subr.bf16.mxu0 %v2503_v18  ;;  %1941 = vmatprep.subr.bf16.mxu1 %v2525_v46 }
 0x259   :  { %1911 = vmatpush1.bf16.msra.mxu0 %v2510_v27  ;;  %1943 = vmatpush1.bf16.msra.mxu1 %v2531_v49 }
 0x25a   :  { %1913 = vmatprep.subr.bf16.mxu0 %v2514_v31  ;;  %1945 = vmatprep.subr.bf16.mxu1 %v2534_v53 }
 0x25d   :  { %1915 = vmatpush1.bf16.msra.mxu0 %v2523_v43  ;;  %1947 = vmatpush1.bf16.msra.mxu1 %v2543_v63 }
 0x25e   :  { %1917 = vmatprep.subr.bf16.mxu0 %v2528_v47  ;;  %1949 = vmatprep.subr.bf16.mxu1 %v2546_v2 }
 0x261   :  { %1919 = vmatpush1.bf16.msra.mxu0 %v2537_v56  ;;  %1951 = vmatpush1.bf16.msra.mxu1 %v2555_v16 }
 0x262   :  { %1921 = vmatprep.subr.bf16.mxu0 %v2540_v59  ;;  %1953 = vmatprep.subr.bf16.mxu1 %v2558_v19 }
 0x265   :  { %1923 = vmatpush1.bf16.msra.mxu0 %v2549_v8  ;;  %1955 = vmatpush1.bf16.msra.mxu1 %v2567_v32 }
 0x266   :  { %1925 = vmatprep.subr.bf16.mxu0 %v2552_v11  ;;  %1957 = vmatprep.subr.bf16.mxu1 %v2570_v33 }
 0x269   :  { %1927 = vmatpush1.bf16.msra.mxu0 %v2561_v25  ;;  %1959 = vmatpush1.bf16.msra.mxu1 %v2577_v41 }
 0x26a   :  { %1929 = vmatprep.subr.bf16.mxu0 %v2564_v28  ;;  %1961 = vmatprep.subr.bf16.mxu1 %v2580_v42 }
 0x26d   :  { %1931 = vmatpush1.bf16.msra.mxu0 %v2573_v40  ;;  %1963 = vmatpush1.bf16.msra.mxu1 %v2584_v48 }
 0x26e   :  { %1965 = vmatprep.subr.bf16.mxu0 %v2492_v5  ;;  %1997 = vmatprep.subr.bf16.mxu1 %v2505_v23 }
 0x323   :  { %v539_v50 = vpop.f32.mrb[4].mxu0  ;;  %v610_v51 = vpop.f32.mrb[4].mxu1 }
 0x324   :  { %v615_v52 = vadd.f32 %v539_v50, %v469_v36  ;;  %v541_v54 = vpop.f32.mrb[5].mxu0  ;;  %v612_v55 = vpop.f32.mrb[5].mxu1  ;;  %v617_v4 = vadd.f32 %v610_v51, %v471_v0  ;;  %v645_v36 = vld [vmem:[#allocation5 + $0x68] sm:$0xff] }
 0x325   :  { %v616_v57 = vadd.f32 %v541_v54, %v470_v45  ;;  %v618_v62 = vadd.f32 %v612_v55, %v472_v61 }
 0x326   :  { %v1636_v58 = vmul.f32 -1.442695, %v615_v52 }
 0x327   :  { %v1637_v60 = vmul.f32 -1.442695, %v616_v57  ;;  %v1638_v3 = vmul.f32 -1.442695, %v618_v62  ;;  %v646_v62 = vld [vmem:[#allocation5 + $0x70] sm:$0xff] }
 0x328   :  { %2283 = vpow2.f32 %v1636_v58 }
 0x329   :  { %2285 = vpow2.f32 %v1637_v60  ;;  %v647_v60 = vld [vmem:[#allocation5 + $0x78] sm:$0xff] }
 0x32a   :  { %2287 = vpow2.f32 %v1638_v3 }
 0x32b   :  { %2289 = vtanh.f32 %v617_v4 }
 0x332   :  { %v2284_v6 = vpop.eup %2283 }
 0x333   :  { %v2286_v7 = vpop.eup %2285  ;;  %v622_v12 = vadd.f32 1.0, %v2284_v6 }
 0x334   :  { %v628_v13 = vadd.f32 1.0, %v2286_v7  ;;  %v2288_v14 = vpop.eup %2287 }
 0x335   :  { %2291 = vrcp.f32 %v622_v12  ;;  %v2290_v17 = vpop.eup %2289  ;;  %v635_v24 = vadd.f32 1.0, %v2288_v14 }
 0x336   :  { %2293 = vrcp.f32 %v628_v13 }
 0x337   :  { %2295 = vrcp.f32 %v635_v24 }
 0x33f   :  { %v2292_v20 = vpop.eup %2291 }
 0x340   :  { %v2294_v21 = vpop.eup %2293  ;;  %v639_v22 = vmul.f32 %v2292_v20, %v2290_v17 }
 0x341   :  { %v638_v29 = vmul.f32 %v2294_v21, %v2664_v35  ;;  %v2296_v37 = vpop.eup %2295  ;;  %v644_v35 = vld [vmem:[#allocation5 + $0x60] sm:$0xff] }
 0x343   :  { %v2702_v30 = vadd.f32 %v639_v22, %v638_v29 }
 0x345   :  { %2297 = vtanh.f32 %v2702_v30 }
 0x34f   :  { %v2298_v39 = vpop.eup %2297 }
 0x350   :  { %v642_v44 = vmul.f32 %v2298_v39, %v2296_v37 }
 0x352   :  { %713 = vmatmul.mubr.f32.vlgmr.msra.gmra.mrb[6].mxu0 %v642_v44  ;;  %784 = vmatmul.mubr.f32.vlgmr.msra.gmra.mrb[6].mxu1 %v642_v44 }
 0x353   :  { %1967 = vmatpush1.bf16.msra.mxu0 %v2494_v9  ;;  %1999 = vmatpush1.bf16.msra.mxu1 %v2507_v26 }
 0x354   :  { %1969 = vmatprep.subr.bf16.mxu0 %v2496_v10  ;;  %2001 = vmatprep.subr.bf16.mxu1 %v2517_v34 }
 0x355   :  { %887 = vmatprep.mubr.f32.mxu0 %v2435_v1  ;;  %958 = vmatprep.mubr.f32.mxu1 %v2435_v1 }
 0x357   :  { %1971 = vmatpush1.bf16.msra.mxu0 %v2500_v15  ;;  %2003 = vmatpush1.bf16.msra.mxu1 %v2519_v38 }
 0x358   :  { %1973 = vmatprep.subr.bf16.mxu0 %v2503_v18  ;;  %2005 = vmatprep.subr.bf16.mxu1 %v2525_v46 }
 0x35b   :  { %1975 = vmatpush1.bf16.msra.mxu0 %v2510_v27  ;;  %2007 = vmatpush1.bf16.msra.mxu1 %v2531_v49 }
 0x35c   :  { %1977 = vmatprep.subr.bf16.mxu0 %v2514_v31  ;;  %2009 = vmatprep.subr.bf16.mxu1 %v2534_v53 }
 0x35f   :  { %1979 = vmatpush1.bf16.msra.mxu0 %v2523_v43  ;;  %2011 = vmatpush1.bf16.msra.mxu1 %v2543_v63 }
 0x360   :  { %1981 = vmatprep.subr.bf16.mxu0 %v2528_v47  ;;  %2013 = vmatprep.subr.bf16.mxu1 %v2546_v2 }
 0x363   :  { %1983 = vmatpush1.bf16.msra.mxu0 %v2537_v56  ;;  %2015 = vmatpush1.bf16.msra.mxu1 %v2555_v16 }
 0x364   :  { %1985 = vmatprep.subr.bf16.mxu0 %v2540_v59  ;;  %2017 = vmatprep.subr.bf16.mxu1 %v2558_v19 }
 0x367   :  { %1987 = vmatpush1.bf16.msra.mxu0 %v2549_v8  ;;  %2019 = vmatpush1.bf16.msra.mxu1 %v2567_v32 }
 0x368   :  { %1989 = vmatprep.subr.bf16.mxu0 %v2552_v11  ;;  %2021 = vmatprep.subr.bf16.mxu1 %v2570_v33 }
 0x36b   :  { %1991 = vmatpush1.bf16.msra.mxu0 %v2561_v25  ;;  %2023 = vmatpush1.bf16.msra.mxu1 %v2577_v41 }
 0x36c   :  { %1993 = vmatprep.subr.bf16.mxu0 %v2564_v28  ;;  %2025 = vmatprep.subr.bf16.mxu1 %v2580_v42 }
 0x36f   :  { %1995 = vmatpush1.bf16.msra.mxu0 %v2573_v40  ;;  %2027 = vmatpush1.bf16.msra.mxu1 %v2584_v48 }
 0x370   :  { %2029 = vmatprep.subr.bf16.mxu0 %v2492_v5  ;;  %2061 = vmatprep.subr.bf16.mxu1 %v2505_v23 }
 0x425   :  { %v714_v45 = vpop.f32.mrb[6].mxu0  ;;  %v785_v50 = vpop.f32.mrb[6].mxu1 }
 0x426   :  { %v790_v51 = vadd.f32 %v714_v45, %v644_v35  ;;  %v716_v52 = vpop.f32.mrb[7].mxu0  ;;  %v787_v54 = vpop.f32.mrb[7].mxu1  ;;  %v792_v3 = vadd.f32 %v785_v50, %v646_v62  ;;  %v820_v35 = vld [vmem:[#allocation5 + $0x88] sm:$0xff] }
 0x427   :  { %v791_v55 = vadd.f32 %v716_v52, %v645_v36  ;;  %v793_v61 = vadd.f32 %v787_v54, %v647_v60 }
 0x428   :  { %v1639_v57 = vmul.f32 -1.442695, %v790_v51 }
 0x429   :  { %v1640_v58 = vmul.f32 -1.442695, %v791_v55  ;;  %v1641_v0 = vmul.f32 -1.442695, %v793_v61  ;;  %v821_v61 = vld [vmem:[#allocation5 + $0x90] sm:$0xff] }
 0x42a   :  { %2299 = vpow2.f32 %v1639_v57 }
 0x42b   :  { %2301 = vpow2.f32 %v1640_v58  ;;  %v822_v58 = vld [vmem:[#allocation5 + $0x98] sm:$0xff] }
 0x42c   :  { %2303 = vpow2.f32 %v1641_v0 }
 0x42d   :  { %2305 = vtanh.f32 %v792_v3 }
 0x434   :  { %v2300_v4 = vpop.eup %2299 }
 0x435   :  { %v2302_v6 = vpop.eup %2301  ;;  %v797_v7 = vadd.f32 1.0, %v2300_v4 }
 0x436   :  { %v803_v12 = vadd.f32 1.0, %v2302_v6  ;;  %v2304_v13 = vpop.eup %2303 }
 0x437   :  { %2307 = vrcp.f32 %v797_v7  ;;  %v2306_v14 = vpop.eup %2305  ;;  %v810_v22 = vadd.f32 1.0, %v2304_v13 }
 0x438   :  { %2309 = vrcp.f32 %v803_v12 }
 0x439   :  { %2311 = vrcp.f32 %v810_v22 }
 0x441   :  { %v2308_v17 = vpop.eup %2307 }
 0x442   :  { %v2310_v20 = vpop.eup %2309  ;;  %v814_v21 = vmul.f32 %v2308_v17, %v2306_v14 }
 0x443   :  { %v813_v24 = vmul.f32 %v2310_v20, %v2702_v30  ;;  %v2312_v37 = vpop.eup %2311  ;;  %v819_v30 = vld [vmem:[#allocation5 + $0x80] sm:$0xff] }
 0x445   :  { %v2740_v29 = vadd.f32 %v814_v21, %v813_v24 }
 0x447   :  { %2313 = vtanh.f32 %v2740_v29 }
 0x451   :  { %v2314_v39 = vpop.eup %2313 }
 0x452   :  { %v817_v44 = vmul.f32 %v2314_v39, %v2312_v37 }
 0x454   :  { %888 = vmatmul.mubr.f32.vlgmr.msra.gmra.mrb[8].mxu0 %v817_v44  ;;  %959 = vmatmul.mubr.f32.vlgmr.msra.gmra.mrb[8].mxu1 %v817_v44 }
 0x455   :  { %2031 = vmatpush1.bf16.msra.mxu0 %v2494_v9  ;;  %2063 = vmatpush1.bf16.msra.mxu1 %v2507_v26 }
 0x456   :  { %2033 = vmatprep.subr.bf16.mxu0 %v2496_v10  ;;  %2065 = vmatprep.subr.bf16.mxu1 %v2517_v34 }
 0x457   :  { %1062 = vmatprep.mubr.f32.mxu0 %v2435_v1  ;;  %1133 = vmatprep.mubr.f32.mxu1 %v2435_v1 }
 0x459   :  { %2035 = vmatpush1.bf16.msra.mxu0 %v2500_v15  ;;  %2067 = vmatpush1.bf16.msra.mxu1 %v2519_v38 }
 0x45a   :  { %2037 = vmatprep.subr.bf16.mxu0 %v2503_v18  ;;  %2069 = vmatprep.subr.bf16.mxu1 %v2525_v46 }
 0x45d   :  { %2039 = vmatpush1.bf16.msra.mxu0 %v2510_v27  ;;  %2071 = vmatpush1.bf16.msra.mxu1 %v2531_v49 }
 0x45e   :  { %2041 = vmatprep.subr.bf16.mxu0 %v2514_v31  ;;  %2073 = vmatprep.subr.bf16.mxu1 %v2534_v53 }
 0x461   :  { %2043 = vmatpush1.bf16.msra.mxu0 %v2523_v43  ;;  %2075 = vmatpush1.bf16.msra.mxu1 %v2543_v63 }
 0x462   :  { %2045 = vmatprep.subr.bf16.mxu0 %v2528_v47  ;;  %2077 = vmatprep.subr.bf16.mxu1 %v2546_v2 }
 0x465   :  { %2047 = vmatpush1.bf16.msra.mxu0 %v2537_v56  ;;  %2079 = vmatpush1.bf16.msra.mxu1 %v2555_v16 }
 0x466   :  { %2049 = vmatprep.subr.bf16.mxu0 %v2540_v59  ;;  %2081 = vmatprep.subr.bf16.mxu1 %v2558_v19 }
 0x469   :  { %2051 = vmatpush1.bf16.msra.mxu0 %v2549_v8  ;;  %2083 = vmatpush1.bf16.msra.mxu1 %v2567_v32 }
 0x46a   :  { %2053 = vmatprep.subr.bf16.mxu0 %v2552_v11  ;;  %2085 = vmatprep.subr.bf16.mxu1 %v2570_v33 }
 0x46d   :  { %2055 = vmatpush1.bf16.msra.mxu0 %v2561_v25  ;;  %2087 = vmatpush1.bf16.msra.mxu1 %v2577_v41 }
 0x46e   :  { %2057 = vmatprep.subr.bf16.mxu0 %v2564_v28  ;;  %2089 = vmatprep.subr.bf16.mxu1 %v2580_v42 }
 0x471   :  { %2059 = vmatpush1.bf16.msra.mxu0 %v2573_v40  ;;  %2091 = vmatpush1.bf16.msra.mxu1 %v2584_v48 }
 0x472   :  { %2093 = vmatprep.subr.bf16.mxu0 %v2492_v5  ;;  %2125 = vmatprep.subr.bf16.mxu1 %v2505_v23 }
 0x527   :  { %v889_v36 = vpop.f32.mrb[8].mxu0  ;;  %v960_v45 = vpop.f32.mrb[8].mxu1 }
 0x528   :  { %v965_v50 = vadd.f32 %v889_v36, %v819_v30  ;;  %v891_v51 = vpop.f32.mrb[9].mxu0  ;;  %v962_v52 = vpop.f32.mrb[9].mxu1  ;;  %v967_v0 = vadd.f32 %v960_v45, %v821_v61  ;;  %v995_v30 = vld [vmem:[#allocation5 + $0xa8] sm:$0xff] }
 0x529   :  { %v966_v54 = vadd.f32 %v891_v51, %v820_v35  ;;  %v968_v60 = vadd.f32 %v962_v52, %v822_v58 }
 0x52a   :  { %v1642_v55 = vmul.f32 -1.442695, %v965_v50 }
 0x52b   :  { %v1643_v57 = vmul.f32 -1.442695, %v966_v54  ;;  %v1644_v62 = vmul.f32 -1.442695, %v968_v60  ;;  %v996_v60 = vld [vmem:[#allocation5 + $0xb0] sm:$0xff] }
 0x52c   :  { %2315 = vpow2.f32 %v1642_v55 }
 0x52d   :  { %2317 = vpow2.f32 %v1643_v57  ;;  %v997_v57 = vld [vmem:[#allocation5 + $0xb8] sm:$0xff] }
 0x52e   :  { %2319 = vpow2.f32 %v1644_v62 }
 0x52f   :  { %2321 = vtanh.f32 %v967_v0 }
 0x536   :  { %v2316_v3 = vpop.eup %2315 }
 0x537   :  { %v2318_v4 = vpop.eup %2317  ;;  %v972_v6 = vadd.f32 1.0, %v2316_v3 }
 0x538   :  { %v978_v7 = vadd.f32 1.0, %v2318_v4  ;;  %v2320_v12 = vpop.eup %2319 }
 0x539   :  { %2323 = vrcp.f32 %v972_v6  ;;  %v2322_v13 = vpop.eup %2321  ;;  %v985_v21 = vadd.f32 1.0, %v2320_v12 }
 0x53a   :  { %2325 = vrcp.f32 %v978_v7 }
 0x53b   :  { %2327 = vrcp.f32 %v985_v21 }
 0x543   :  { %v2324_v14 = vpop.eup %2323 }
 0x544   :  { %v2326_v17 = vpop.eup %2325  ;;  %v989_v20 = vmul.f32 %v2324_v14, %v2322_v13 }
 0x545   :  { %v988_v22 = vmul.f32 %v2326_v17, %v2740_v29  ;;  %v2328_v37 = vpop.eup %2327  ;;  %v994_v29 = vld [vmem:[#allocation5 + $0xa0] sm:$0xff] }
 0x547   :  { %v2778_v24 = vadd.f32 %v989_v20, %v988_v22 }
 0x549   :  { %2329 = vtanh.f32 %v2778_v24 }
 0x553   :  { %v2330_v39 = vpop.eup %2329 }
 0x554   :  { %v992_v44 = vmul.f32 %v2330_v39, %v2328_v37  ;;  %v1524_v39 = vld [vmem:[%s2910_s2 + $0x8] sm:$0xff] }
 0x556   :  { %1063 = vmatmul.mubr.f32.vlgmr.msra.gmra.mrb[10].mxu0 %v992_v44  ;;  %1134 = vmatmul.mubr.f32.vlgmr.msra.gmra.mrb[10].mxu1 %v992_v44 }
 0x557   :  { %2095 = vmatpush1.bf16.msra.mxu0 %v2494_v9  ;;  %2127 = vmatpush1.bf16.msra.mxu1 %v2507_v26 }
 0x558   :  { %2097 = vmatprep.subr.bf16.mxu0 %v2496_v10  ;;  %2129 = vmatprep.subr.bf16.mxu1 %v2517_v34 }
 0x559   :  { %1237 = vmatprep.mubr.f32.mxu0 %v2435_v1  ;;  %1308 = vmatprep.mubr.f32.mxu1 %v2435_v1 }
 0x55b   :  { %2099 = vmatpush1.bf16.msra.mxu0 %v2500_v15  ;;  %2131 = vmatpush1.bf16.msra.mxu1 %v2519_v38 }
 0x55c   :  { %2101 = vmatprep.subr.bf16.mxu0 %v2503_v18  ;;  %2133 = vmatprep.subr.bf16.mxu1 %v2525_v46 }
 0x55f   :  { %2103 = vmatpush1.bf16.msra.mxu0 %v2510_v27  ;;  %2135 = vmatpush1.bf16.msra.mxu1 %v2531_v49 }
 0x560   :  { %2105 = vmatprep.subr.bf16.mxu0 %v2514_v31  ;;  %2137 = vmatprep.subr.bf16.mxu1 %v2534_v53 }
 0x563   :  { %2107 = vmatpush1.bf16.msra.mxu0 %v2523_v43  ;;  %2139 = vmatpush1.bf16.msra.mxu1 %v2543_v63 }
 0x564   :  { %2109 = vmatprep.subr.bf16.mxu0 %v2528_v47  ;;  %2141 = vmatprep.subr.bf16.mxu1 %v2546_v2 }
 0x567   :  { %2111 = vmatpush1.bf16.msra.mxu0 %v2537_v56  ;;  %2143 = vmatpush1.bf16.msra.mxu1 %v2555_v16 }
 0x568   :  { %2113 = vmatprep.subr.bf16.mxu0 %v2540_v59  ;;  %2145 = vmatprep.subr.bf16.mxu1 %v2558_v19 }
 0x56b   :  { %2115 = vmatpush1.bf16.msra.mxu0 %v2549_v8  ;;  %2147 = vmatpush1.bf16.msra.mxu1 %v2567_v32 }
 0x56c   :  { %2117 = vmatprep.subr.bf16.mxu0 %v2552_v11  ;;  %2149 = vmatprep.subr.bf16.mxu1 %v2570_v33 }
 0x56f   :  { %2119 = vmatpush1.bf16.msra.mxu0 %v2561_v25  ;;  %2151 = vmatpush1.bf16.msra.mxu1 %v2577_v41 }
 0x570   :  { %2121 = vmatprep.subr.bf16.mxu0 %v2564_v28  ;;  %2153 = vmatprep.subr.bf16.mxu1 %v2580_v42 }
 0x573   :  { %2123 = vmatpush1.bf16.msra.mxu0 %v2573_v40  ;;  %2155 = vmatpush1.bf16.msra.mxu1 %v2584_v48 }
 0x574   :  { %2157 = vmatprep.subr.bf16.mxu0 %v2492_v5  ;;  %2189 = vmatprep.subr.bf16.mxu1 %v2505_v23 }
 0x629   :  { %v1064_v35 = vpop.f32.mrb[10].mxu0  ;;  %v1135_v36 = vpop.f32.mrb[10].mxu1 }
 0x62a   :  { %v1140_v45 = vadd.f32 %v1064_v35, %v994_v29  ;;  %v1066_v50 = vpop.f32.mrb[11].mxu0  ;;  %v1137_v51 = vpop.f32.mrb[11].mxu1  ;;  %v1142_v62 = vadd.f32 %v1135_v36, %v996_v60  ;;  %v2436_v29 = vmov 0.0|0.0   ;;  %v1526_v35 = vld [vmem:[%s2910_s2 + $0x18] sm:$0xff] }
 0x62b   :  { %v1141_v52 = vadd.f32 %v1066_v50, %v995_v30  ;;  %v1143_v58 = vadd.f32 %v1137_v51, %v997_v57  ;;  %v1525_v30 = vld [vmem:[%s2910_s2 + $0x10] sm:$0xff]  ;;  %v1528_v50 = vld [vmem:[%s2910_s2 + $0x28] sm:$0xff]  ;;  %v1531_v57 = vld [vmem:[%s2910_s2 + $0x40] sm:$0xff] }
 0x62c   :  { %v1645_v54 = vmul.f32 -1.442695, %v1140_v45  ;;  %v2224_v36 = vpack.c.bf16 %v1526_v35, %v1525_v30  ;;  %v1527_v45 = vld [vmem:[%s2910_s2 + $0x20] sm:$0xff] }
 0x62d   :  { %v1646_v55 = vmul.f32 -1.442695, %v1141_v52  ;;  %v1647_v61 = vmul.f32 -1.442695, %v1143_v58  ;;  %v2227_v51 = vpack.c.bf16 %v1528_v50, %v1527_v45  ;;  %v1529_v52 = vld [vmem:[%s2910_s2 + $0x30] sm:$0xff]  ;;  %v1532_v58 = vld [vmem:[%s2910_s2 + $0x48] sm:$0xff] }
 0x62e   :  { %2331 = vpow2.f32 %v1645_v54  ;;  %v1530_v54 = vld [vmem:[%s2910_s2 + $0x38] sm:$0xff]  ;;  %v2233_v60 = vpack.c.bf16 %v1532_v58, %v1531_v57 }
 0x62f   :  { %2333 = vpow2.f32 %v1646_v55  ;;  %v2230_v55 = vpack.c.bf16 %v1530_v54, %v1529_v52 }
 0x630   :  { %2335 = vpow2.f32 %v1647_v61  ;;  %v1533_v61 = vld [vmem:[%s2910_s2 + $0x50] sm:$0xff] }
 0x631   :  { %2337 = vtanh.f32 %v1142_v62  ;;  %v1534_v62 = vld [vmem:[%s2910_s2 + $0x58] sm:$0xff] }
 0x638   :  { %v2332_v5 = vpop.eup %2331 }
 0x639   :  { %v2334_v0 = vpop.eup %2333  ;;  %v1147_v23 = vadd.f32 1.0, %v2332_v5  ;;  %v1535_v5 = vld [vmem:[%s2910_s2 + $0x60] sm:$0xff] }
 0x63a   :  { %v1153_v3 = vadd.f32 1.0, %v2334_v0  ;;  %v2336_v4 = vpop.eup %2335  ;;  %v2236_v0 = vpack.c.bf16 %v1534_v62, %v1533_v61 }
 0x63b   :  { %2339 = vrcp.f32 %v1147_v23  ;;  %v2338_v6 = vpop.eup %2337  ;;  %v1160_v14 = vadd.f32 1.0, %v2336_v4  ;;  %v1536_v23 = vld [vmem:[%s2910_s2 + $0x68] sm:$0xff]  ;;  %v1537_v4 = vld [vmem:[%s2910_s2 + $0x70] sm:$0xff] }
 0x63c   :  { %2341 = vrcp.f32 %v1153_v3  ;;  %v2239_v3 = vpack.c.bf16 %v1536_v23, %v1535_v5 }
 0x63d   :  { %2343 = vrcp.f32 %v1160_v14 }
 0x645   :  { %v2340_v7 = vpop.eup %2339 }
 0x646   :  { %v2342_v12 = vpop.eup %2341  ;;  %v1164_v13 = vmul.f32 %v2340_v7, %v2338_v6  ;;  %v1538_v6 = vld [vmem:[%s2910_s2 + $0x78] sm:$0xff] }
 0x647   :  { %v1163_v17 = vmul.f32 %v2342_v12, %v2778_v24  ;;  %v2344_v21 = vpop.eup %2343  ;;  %v1523_v24 = vld [vmem:[%s2910_s2] sm:$0xff]  ;;  %v2242_v7 = vpack.c.bf16 %v1538_v6, %v1537_v4 }
 0x648   :  { %v2221_v44 = vpack.c.bf16 %v1524_v39, %v1523_v24  ;;  %v1344_v12 = vld [vmem:[#allocation5 + $0xe0] sm:$0xff] }
 0x649   :  { %v2816_v20 = vadd.f32 %v1164_v13, %v1163_v17  ;;  %v1345_v13 = vld [vmem:[#allocation5 + $0xe8] sm:$0xff] }
 0x64b   :  { %2345 = vtanh.f32 %v2816_v20 }
 0x655   :  { %v2346_v22 = vpop.eup %2345 }
 0x656   :  { %v1167_v37 = vmul.f32 %v2346_v22, %v2344_v21 }
 0x658   :  { %1238 = vmatmul.mubr.f32.vlgmr.msra.gmra.mrb[12].mxu0 %v1167_v37  ;;  %1309 = vmatmul.mubr.f32.vlgmr.msra.gmra.mrb[12].mxu1 %v1167_v37 }
 0x659   :  { %2159 = vmatpush1.bf16.msra.mxu0 %v2494_v9  ;;  %2191 = vmatpush1.bf16.msra.mxu1 %v2507_v26  ;;  %v1169_v9 = vld [vmem:[#allocation5 + $0xc0] sm:$0xff] }
 0x65a   :  { %2161 = vmatprep.subr.bf16.mxu0 %v2496_v10  ;;  %2193 = vmatprep.subr.bf16.mxu1 %v2517_v34  ;;  %v1170_v10 = vld [vmem:[#allocation5 + $0xc8] sm:$0xff] }
 0x65b   :  { %1412 = vmatprep.mubr.f32.mxu0 %v2435_v1  ;;  %1483 = vmatprep.mubr.f32.mxu1 %v2435_v1 }
 0x65d   :  { %2163 = vmatpush1.bf16.msra.mxu0 %v2500_v15  ;;  %2195 = vmatpush1.bf16.msra.mxu1 %v2519_v38 }
 0x65e   :  { %2165 = vmatprep.subr.bf16.mxu0 %v2503_v18  ;;  %2197 = vmatprep.subr.bf16.mxu1 %v2525_v46  ;;  %v1172_v46 = vld [vmem:[#allocation5 + $0xd8] sm:$0xff] }
 0x661   :  { %2167 = vmatpush1.bf16.msra.mxu0 %v2510_v27  ;;  %2199 = vmatpush1.bf16.msra.mxu1 %v2531_v49  ;;  %v1171_v49 = vld [vmem:[#allocation5 + $0xd0] sm:$0xff] }
 0x662   :  { %2169 = vmatprep.subr.bf16.mxu0 %v2514_v31  ;;  %2201 = vmatprep.subr.bf16.mxu1 %v2534_v53 }
 0x665   :  { %2171 = vmatpush1.bf16.msra.mxu0 %v2523_v43  ;;  %2203 = vmatpush1.bf16.msra.mxu1 %v2543_v63 }
 0x666   :  { %2173 = vmatprep.subr.bf16.mxu0 %v2528_v47  ;;  %2205 = vmatprep.subr.bf16.mxu1 %v2546_v2 }
 0x669   :  { %2175 = vmatpush1.bf16.msra.mxu0 %v2537_v56  ;;  %2207 = vmatpush1.bf16.msra.mxu1 %v2555_v16 }
 0x66a   :  { %2177 = vmatprep.subr.bf16.mxu0 %v2540_v59  ;;  %2209 = vmatprep.subr.bf16.mxu1 %v2558_v19 }
 0x66d   :  { %2179 = vmatpush1.bf16.msra.mxu0 %v2549_v8  ;;  %2211 = vmatpush1.bf16.msra.mxu1 %v2567_v32 }
 0x66e   :  { %2181 = vmatprep.subr.bf16.mxu0 %v2552_v11  ;;  %2213 = vmatprep.subr.bf16.mxu1 %v2570_v33 }
 0x671   :  { %2183 = vmatpush1.bf16.msra.mxu0 %v2561_v25  ;;  %2215 = vmatpush1.bf16.msra.mxu1 %v2577_v41 }
 0x672   :  { %2185 = vmatprep.subr.bf16.mxu0 %v2564_v28  ;;  %2217 = vmatprep.subr.bf16.mxu1 %v2580_v42 }
 0x675   :  { %2187 = vmatpush1.bf16.msra.mxu0 %v2573_v40  ;;  %2219 = vmatpush1.bf16.msra.mxu1 %v2584_v48 }
 0x676   :  { %2220 = vmatprep.subr.bf16.mxu0 %v2436_v29 }
 0x72b   :  { %v1239_v15 = vpop.f32.mrb[12].mxu0  ;;  %v1310_v18 = vpop.f32.mrb[12].mxu1 }
 0x72c   :  { %v1315_v26 = vadd.f32 %v1239_v15, %v1169_v9  ;;  %v1241_v27 = vpop.f32.mrb[13].mxu0  ;;  %v1312_v31 = vpop.f32.mrb[13].mxu1  ;;  %v1317_v56 = vadd.f32 %v1310_v18, %v1171_v49  ;;  %v1346_v18 = vld [vmem:[#allocation5 + $0xf0] sm:$0xff] }
 0x72d   :  { %v1316_v34 = vadd.f32 %v1241_v27, %v1170_v10  ;;  %v1318_v47 = vadd.f32 %v1312_v31, %v1172_v46  ;;  %v1347_v10 = vld [vmem:[#allocation5 + $0xf8] sm:$0xff] }
 0x72e   :  { %v1648_v38 = vmul.f32 -1.442695, %v1315_v26 }
 0x72f   :  { %v1649_v43 = vmul.f32 -1.442695, %v1316_v34  ;;  %v1650_v53 = vmul.f32 -1.442695, %v1318_v47 }
 0x730   :  { %2347 = vpow2.f32 %v1648_v38 }
 0x731   :  { %2349 = vpow2.f32 %v1649_v43 }
 0x732   :  { %2351 = vpow2.f32 %v1650_v53 }
 0x733   :  { %2353 = vtanh.f32 %v1317_v56 }
 0x73a   :  { %v2348_v59 = vpop.eup %2347 }
 0x73b   :  { %v2350_v63 = vpop.eup %2349  ;;  %v1322_v2 = vadd.f32 1.0, %v2348_v59 }
 0x73c   :  { %v1328_v8 = vadd.f32 1.0, %v2350_v63  ;;  %v2352_v11 = vpop.eup %2351 }
 0x73d   :  { %2355 = vrcp.f32 %v1322_v2  ;;  %v2354_v16 = vpop.eup %2353  ;;  %v1335_v32 = vadd.f32 1.0, %v2352_v11 }
 0x73e   :  { %2357 = vrcp.f32 %v1328_v8 }
 0x73f   :  { %2359 = vrcp.f32 %v1335_v32 }
 0x747   :  { %v2356_v19 = vpop.eup %2355 }
 0x748   :  { %v2358_v25 = vpop.eup %2357  ;;  %v1339_v28 = vmul.f32 %v2356_v19, %v2354_v16  ;;  %v1654_v19 = vld [vmem:[#allocation4] ss:$0 sm:$0xff] }
 0x749   :  { %v1338_v33 = vmul.f32 %v2358_v25, %v2816_v20  ;;  %v2360_v41 = vpop.eup %2359 }
 0x74b   :  { %v2852_v40 = vadd.f32 %v1339_v28, %v1338_v33 }
 0x74d   :  { %2361 = vtanh.f32 %v2852_v40 }
 0x757   :  { %v2362_v42 = vpop.eup %2361 }
 0x758   :  { %v1342_v48 = vmul.f32 %v2362_v42, %v2360_v41 }
 0x75a   :  { %1413 = vmatmul.mubr.f32.vlgmr.msra.gmra.mrb[14].mxu0 %v1342_v48  ;;  %1484 = vmatmul.mubr.f32.vlgmr.msra.gmra.mrb[14].mxu1 %v1342_v48 }
 0x75b   :  { %2222 = vmatpush3.bf16.msra.mxu0 %v2221_v44  ;;  %1705 = vmatprep.mubr.msk.f32.mxu0 %vm2437_vm0, %v2435_v1 }
 0x75c   :  { %2223 = vmatprep.subr.bf16.mxu0 %v2436_v29 }
 0x75f   :  { %2225 = vmatpush3.bf16.msra.mxu0 %v2224_v36 }
 0x760   :  { %2226 = vmatprep.subr.bf16.mxu0 %v2436_v29 }
 0x763   :  { %2228 = vmatpush3.bf16.msra.mxu0 %v2227_v51 }
 0x764   :  { %2229 = vmatprep.subr.bf16.mxu0 %v2436_v29 }
 0x767   :  { %2231 = vmatpush3.bf16.msra.mxu0 %v2230_v55 }
 0x768   :  { %2232 = vmatprep.subr.bf16.mxu0 %v2436_v29 }
 0x76b   :  { %2234 = vmatpush3.bf16.msra.mxu0 %v2233_v60 }
 0x76c   :  { %2235 = vmatprep.subr.bf16.mxu0 %v2436_v29 }
 0x76f   :  { %2237 = vmatpush3.bf16.msra.mxu0 %v2236_v0 }
 0x770   :  { %2238 = vmatprep.subr.bf16.mxu0 %v2436_v29 }
 0x773   :  { %2240 = vmatpush3.bf16.msra.mxu0 %v2239_v3 }
 0x774   :  { %2241 = vmatprep.subr.bf16.mxu0 %v2436_v29 }
 0x777   :  { %2243 = vmatpush3.bf16.msra.mxu0 %v2242_v7 }
 0x82d   :  { %v1414_v14 = vpop.f32.mrb[14].mxu0  ;;  %v1485_v17 = vpop.f32.mrb[14].mxu1 }
 0x82e   :  { %v1490_v1 = vadd.f32 %v1414_v14, %v1344_v12  ;;  %v1416_v20 = vpop.f32.mrb[15].mxu0  ;;  %v1487_v21 = vpop.f32.mrb[15].mxu1  ;;  %v1492_v27 = vadd.f32 %v1485_v17, %v1346_v18 }
 0x82f   :  { %v1491_v22 = vadd.f32 %v1416_v20, %v1345_v13  ;;  %v1493_v15 = vadd.f32 %v1487_v21, %v1347_v10 }
 0x830   :  { %v1651_v37 = vmul.f32 -1.442695, %v1490_v1 }
 0x831   :  { %v1652_v9 = vmul.f32 -1.442695, %v1491_v22  ;;  %v1653_v26 = vmul.f32 -1.442695, %v1493_v15 }
 0x832   :  { %2363 = vpow2.f32 %v1651_v37 }
 0x833   :  { %2365 = vpow2.f32 %v1652_v9 }
 0x834   :  { %2367 = vpow2.f32 %v1653_v26 }
 0x835   :  { %2369 = vtanh.f32 %v1492_v27 }
 0x83c   :  { %v2364_v31 = vpop.eup %2363 }
 0x83d   :  { %v2366_v34 = vpop.eup %2365  ;;  %v1497_v38 = vadd.f32 1.0, %v2364_v31 }
 0x83e   :  { %v1503_v43 = vadd.f32 1.0, %v2366_v34  ;;  %v2368_v46 = vpop.eup %2367 }
 0x83f   :  { %2371 = vrcp.f32 %v1497_v38  ;;  %v2370_v47 = vpop.eup %2369  ;;  %v1510_v59 = vadd.f32 1.0, %v2368_v46 }
 0x840   :  { %2373 = vrcp.f32 %v1503_v43 }
 0x841   :  { %2375 = vrcp.f32 %v1510_v59 }
 0x849   :  { %v2372_v49 = vpop.eup %2371 }
 0x84a   :  { %v2374_v53 = vpop.eup %2373  ;;  %v1514_v56 = vmul.f32 %v2372_v49, %v2370_v47 }
 0x84b   :  { %v1513_v63 = vmul.f32 %v2374_v53, %v2852_v40  ;;  %v2376_v8 = vpop.eup %2375 }
 0x84d   :  { %v1515_v2 = vadd.f32 %v1514_v56, %v1513_v63 }
 0x84f   :  { %2377 = vtanh.f32 %v1515_v2 }
 0x859   :  { %v2378_v11 = vpop.eup %2377 }
 0x85a   :  { %v1517_v16 = vmul.f32 %v2378_v11, %v2376_v8 }
 0x85c   :  { %1706 = vmatmul.mubr.f32.vlgmr.msra.gmra.mrb[16].mxu0 %v1517_v16 }
 0x92f   :  { %v1612_v25 = vpop.f32.mrb[16].mxu0 }
 0x930   :  { %v1613_v28 = vadd.f32 %v1654_v19, %v1612_v25  ;;  %v1707_v32 = vpop.f32.mrb[17].mxu0 }
 0x932   :  { %v1655_v33 = vmul.f32 -1.442695, %v1613_v28 }
 0x934   :  { %2379 = vpow2.f32 %v1655_v33 }
 0x93e   :  { %v2380_v41 = vpop.eup %2379 }
 0x93f   :  { %v1619_v42 = vadd.f32 1.0, %v2380_v41 }
 0x941   :  { %2381 = vrcp.f32 %v1619_v42 }
 0x94b   :  { %v2382_v48 = vpop.eup %2381 }
 0x94c   :  { %1623 = vst.msk [vmem:[%s2912_s4] sm:$0xff] %vm1622_vm1, %v2382_v48 }
 0x94d   :  { %1628 = vsyncpa [#allocation6], 1 }
 0x94e   :  { %1629 = vsyncpa [#allocation8], 1 }

</bundles_post_ra>
